<compile_context>
chip_gen: v5e
topology: v5e:2x2
jax: 0.10.0
libtpu: 0.0.40
codegen_flags: <defaults>
</compile_context>

<pallas_src>
import numpy as np
import jax
import jax.numpy as jnp
from jax import lax
from jax.experimental import pallas as pl
from jax.experimental.pallas import tpu as pltpu

# ---- Model13 hyperparameters fixed by __init__ ----
HIDDEN = 128          # hidden_size
NUM_FILTERS = 128     # num_filters
PADDING = 0           # kernel_size == input_size  ->  conv_out == 1

MAX_BATCH_TILE = 256  # rows per batch tile (MXU height on v6e/v7x)
TIME_CHUNK = 32       # timesteps of gate pre-activations computed per grid step


def _round_up(x, m):
    return ((x + m - 1) // m) * m


def make_model13_kernel(chunk, Bt, H, unroll):
    """Kernel body for one (batch-tile, time-chunk) grid step.

    Row layout inside a block: row = t_local * Bt + b_local.
    """

    def kernel(x_ref, wf_ref, bf_ref, whh_ref, h0_ref, c0_ref,
               out_ref, gx_ref, h_sc, c_sc):
        tc = pl.program_id(1)                     # time-chunk index (arbitrary axis)

        # ---- (re)initialize the recurrent carry at the start of each batch tile ----
        @pl.when(tc == 0)
        def _():
            h_sc[...] = jnp.broadcast_to(h0_ref[...], (Bt, H))
            c_sc[...] = jnp.broadcast_to(c0_ref[...], (Bt, H))

        # ---- conv + LSTM input projection fused: one bf16 MXU matmul per chunk ----
        gx_ref[...] = (jnp.dot(x_ref[...], wf_ref[...],
                               preferred_element_type=jnp.float32)
                       + bf_ref[...]).astype(jnp.bfloat16)

        whh = whh_ref[...]                                     # (H, 4H) bf16

        def step(t, carry):
            h, c = carry                                       # (Bt, H) f32 each
            row = pl.multiple_of(t * Bt, Bt)                   # tile-aligned start
            # one contiguous (Bt, 4H) load + bf16 MXU matmul with f32 accumulation
            gates = gx_ref[pl.ds(row, Bt), :].astype(jnp.float32) + jnp.dot(
                h.astype(jnp.bfloat16), whh, preferred_element_type=jnp.float32)
            # PyTorch gate order: i, f, g, o
            i_g = jax.nn.sigmoid(gates[:, 0 * H:1 * H])
            f_g = jax.nn.sigmoid(gates[:, 1 * H:2 * H])
            g_g = jnp.tanh(gates[:, 2 * H:3 * H])
            o_g = jax.nn.sigmoid(gates[:, 3 * H:4 * H])
            c_new = f_g * c + i_g * g_g
            h_new = o_g * jnp.tanh(c_new)
            # lane-dense (Bt, 128) contiguous bf16 store of the hidden state
            out_ref[pl.ds(row, Bt), :] = h_new.astype(jnp.bfloat16)
            return (h_new, c_new)

        h_fin, c_fin = lax.fori_loop(0, chunk, step,
                                     (h_sc[...], c_sc[...]), unroll=unroll)
        h_sc[...] = h_fin
        c_sc[...] = c_fin

    return kernel


def prepare_model13_params(params):
    """One-time parameter preprocessing (hoisted out of the forward path)."""
    H, NF = HIDDEN, NUM_FILTERS
    conv_w = jnp.asarray(params["conv_w"], jnp.float32).reshape(NF, -1)   # (NF, L)
    conv_b = jnp.asarray(params["conv_b"], jnp.float32)                   # (NF,)
    w_ih = jnp.asarray(params["w_ih"], jnp.float32)                       # (4H, NF)
    w_hh = jnp.asarray(params["w_hh"], jnp.float32)                       # (4H, H)
    b_ih = jnp.asarray(params["b_ih"], jnp.float32)
    b_hh = jnp.asarray(params["b_hh"], jnp.float32)

    # Conv (dense L->NF projection) fused with the LSTM input projection.
    w_fused = (conv_w.T @ w_ih.T).astype(jnp.bfloat16)                    # (L, 4H)
    b_fused = (conv_b @ w_ih.T + b_ih + b_hh)[None, :]                    # (1, 4H) f32

    return dict(
        w_fused=w_fused,
        b_fused=b_fused,
        whh=w_hh.T.astype(jnp.bfloat16),                                  # (H, 4H)
        h0=jnp.asarray(params["h0"], jnp.float32).reshape(1, H),
        c0=jnp.asarray(params["c0"], jnp.float32).reshape(1, H),
        w_out=jnp.asarray(params["w_out"], jnp.float32),                  # (O, H)
        b_out=jnp.asarray(params["b_out"], jnp.float32),                  # (O,)
    )


@jax.jit
def model13_forward(x, prep):
    """Pallas implementation of Model13.forward. x: (B, T, input_size) f32."""
    B, T, L = x.shape
    H = HIDDEN

    # ---- tiling (static under jit) ----
    Bt = min(_round_up(B, 8), MAX_BATCH_TILE)       # rows per batch tile
    Bp = _round_up(B, Bt)                           # padded batch
    NBT = Bp // Bt
    chunk = T if T <= TIME_CHUNK else TIME_CHUNK    # timesteps per grid step
    Tp = _round_up(T, chunk)                        # padded sequence length
    NTC = Tp // chunk
    unroll = True if chunk <= 16 else 8
    chunk_rows = chunk * Bt

    # ---- layout: per batch tile, time-major rows (row = t_local*Bt + b_local) ----
    xp = jnp.pad(x.astype(jnp.float32), ((0, Bp - B), (0, Tp - T), (0, 0)))
    xp = xp.reshape(NBT, Bt, NTC, chunk, L)
    xp = jnp.transpose(xp, (0, 2, 3, 1, 4))                     # (NBT, NTC, chunk, Bt, L)
    x_flat = xp.reshape(NBT * NTC * chunk_rows, L).astype(jnp.bfloat16)

    kernel = make_model13_kernel(chunk, Bt, H, unroll)

    vmem_bytes = int(
        4 * chunk_rows * L * 2            # x blocks (double-buffered, bf16)
        + 4 * chunk_rows * H * 2          # out blocks (double-buffered, bf16)
        + chunk_rows * 4 * H * 2          # gx scratch (bf16)
        + (L + H) * 4 * H * 2             # fused weights (bf16)
        + 4 * H * 4 + 2 * H * 4           # bias + h0 + c0
        + 2 * Bt * H * 4                  # h/c carry scratch (f32)
        + (8 << 20))                      # headroom
    vmem_bytes = min(vmem_bytes, 64 << 20)

    h_all = pl.pallas_call(
        kernel,
        out_shape=jax.ShapeDtypeStruct((NBT * NTC * chunk_rows, H), jnp.bfloat16),
        grid_spec=pltpu.PrefetchScalarGridSpec(
            num_scalar_prefetch=0,
            grid=(NBT, NTC),
            in_specs=[
                pl.BlockSpec((chunk_rows, L), lambda i, j: (i * NTC + j, 0)),
                pl.BlockSpec((L, 4 * H), lambda i, j: (0, 0)),
                pl.BlockSpec((1, 4 * H), lambda i, j: (0, 0)),
                pl.BlockSpec((H, 4 * H), lambda i, j: (0, 0)),
                pl.BlockSpec((1, H), lambda i, j: (0, 0)),
                pl.BlockSpec((1, H), lambda i, j: (0, 0)),
            ],
            out_specs=pl.BlockSpec((chunk_rows, H), lambda i, j: (i * NTC + j, 0)),
            scratch_shapes=[
                pltpu.VMEM((chunk_rows, 4 * H), jnp.bfloat16),  # gx (gate pre-acts)
                pltpu.VMEM((Bt, H), jnp.float32),               # h carry
                pltpu.VMEM((Bt, H), jnp.float32),               # c carry
            ],
        ),
        compiler_params=pltpu.CompilerParams(
            dimension_semantics=("parallel", "arbitrary"),
            vmem_limit_bytes=vmem_bytes),
    )(x_flat, prep["w_fused"], prep["b_fused"], prep["whh"], prep["h0"], prep["c0"])

    # ---- undo the layout, drop padding, apply hiddenToClass (tiny O=4) once ----
    hs = h_all.reshape(NBT, NTC, chunk, Bt, H)
    hs = jnp.transpose(hs, (0, 3, 1, 2, 4)).reshape(Bp, Tp, H)[:B, :T, :]
    hs = hs.astype(jnp.float32)                                 # (B, T, H)
    return hs @ prep["w_out"].T + prep["b_out"]


def reference_forward(x, params):
    """Pure-JAX f32 mirror of the PyTorch Model13.forward (for validation)."""
    B, T, L = x.shape
    H, NF = HIDDEN, NUM_FILTERS
    # BatchNorm output is computed but discarded in Model13.forward -> omitted here too.
    xf = x.reshape(-1, L)
    conv_w = params["conv_w"].reshape(NF, L)
    feat = xf @ conv_w.T + params["conv_b"]                    # conv_out == 1
    feat = feat.reshape(B, T, NF)

    wih, whh = params["w_ih"], params["w_hh"]
    bih, bhh = params["b_ih"], params["b_hh"]
    h = jnp.broadcast_to(params["h0"].reshape(1, H), (B, H))
    c = jnp.broadcast_to(params["c0"].reshape(1, H), (B, H))

    def step(carry, xt):
        h, c = carry
        gates = xt @ wih.T + bih + h @ whh.T + bhh
        i, f, g, o = jnp.split(gates, 4, axis=1)
        i, f, g, o = jax.nn.sigmoid(i), jax.nn.sigmoid(f), jnp.tanh(g), jax.nn.sigmoid(o)
        c = f * c + i * g
        h = o * jnp.tanh(c)
        return (h, c), h

    (_, _), hs = lax.scan(step, (h, c), jnp.swapaxes(feat, 0, 1))
    hs = jnp.swapaxes(hs, 0, 1)                                # (B, T, H)
    return hs @ params["w_out"].T + params["b_out"]


if __name__ == "__main__":
    # Small deterministic setup: input_size=16, output_size=4, batch=2, seq=8
    B, T, L, O = 2, 8, 16, 4
    H, NF = HIDDEN, NUM_FILTERS
    scale = 0.05

    key = jax.random.PRNGKey(0)
    ks = jax.random.split(key, 12)
    params = dict(
        conv_w=jax.random.normal(ks[0], (NF, 1, L), jnp.float32) * scale,  # Conv1d(1, NF, K=L)
        conv_b=jax.random.normal(ks[1], (NF,), jnp.float32) * scale,
        w_ih=jax.random.normal(ks[2], (4 * H, NF), jnp.float32) * scale,   # lstm_input = NF
        w_hh=jax.random.normal(ks[3], (4 * H, H), jnp.float32) * scale,
        b_ih=jax.random.normal(ks[4], (4 * H,), jnp.float32) * scale,
        b_hh=jax.random.normal(ks[5], (4 * H,), jnp.float32) * scale,
        w_out=jax.random.normal(ks[6], (O, H), jnp.float32) * scale,
        b_out=jax.random.normal(ks[7], (O,), jnp.float32) * scale,
        h0=jax.random.uniform(ks[8], (1, 1, H), jnp.float32),              # torch.rand init
        c0=jax.random.uniform(ks[9], (1, 1, H), jnp.float32),
    )
    x = jax.random.normal(ks[10], (B, T, L), jnp.float32)

    prep = prepare_model13_params(params)
    out = jax.block_until_ready(model13_forward(x, prep))
    ref = jax.block_until_ready(reference_forward(x, params))

    assert out.shape == (B, T, O), out.shape
    # bf16 MXU inputs / bf16 hidden writeback with f32 accumulation -> looser tolerance
    np.testing.assert_allclose(np.asarray(out), np.asarray(ref), rtol=5e-2, atol=5e-3)
    print("KERNEL_OK")
</pallas_src>

<mosaic_0001>
module attributes {stable_mosaic.version = 11 : i64} {
  func.func @kernel(%arg0: i32, %arg1: i32, %arg2: memref<64x16xbf16, #tpu.memory_space<vmem>>, %arg3: memref<16x512xbf16, #tpu.memory_space<vmem>>, %arg4: memref<1x512xf32, #tpu.memory_space<vmem>>, %arg5: memref<128x512xbf16, #tpu.memory_space<vmem>>, %arg6: memref<1x128xf32, #tpu.memory_space<vmem>>, %arg7: memref<1x128xf32, #tpu.memory_space<vmem>>, %arg8: memref<64x128xbf16, #tpu.memory_space<vmem>>, %arg9: memref<64x512xbf16, #tpu.memory_space<vmem>>, %arg10: memref<8x128xf32, #tpu.memory_space<vmem>>, %arg11: memref<8x128xf32, #tpu.memory_space<vmem>>) attributes {dimension_semantics = [#tpu.dimension_semantics<parallel>, #tpu.dimension_semantics<arbitrary>], iteration_bounds = array<i64: 1, 1>, scalar_prefetch = 0 : i64, scratch_operands = 3 : i64, tpu.core_type = #tpu.core_type<tc>, window_params = [{transform_indices = @transform_0, window_bounds = array<i64: 64, 16>}, {pipeline_mode = #tpu.pipeline_mode<synchronous>, transform_indices = @transform_1, window_bounds = array<i64: 16, 512>}, {pipeline_mode = #tpu.pipeline_mode<synchronous>, transform_indices = @transform_2, window_bounds = array<i64: 1, 512>}, {pipeline_mode = #tpu.pipeline_mode<synchronous>, transform_indices = @transform_3, window_bounds = array<i64: 128, 512>}, {pipeline_mode = #tpu.pipeline_mode<synchronous>, transform_indices = @transform_4, window_bounds = array<i64: 1, 128>}, {pipeline_mode = #tpu.pipeline_mode<synchronous>, transform_indices = @transform_5, window_bounds = array<i64: 1, 128>}, {transform_indices = @transform_6, window_bounds = array<i64: 64, 128>}]} {
    %c0_i32 = arith.constant 0 : i32
    %0 = arith.cmpi eq, %arg1, %c0_i32 : i32
    %1 = arith.extui %0 : i1 to i32
    %c0_i32_0 = arith.constant 0 : i32
    %2 = arith.cmpi ne, %1, %c0_i32_0 : i32
    scf.if %2 {
      %c0_75 = arith.constant 0 : index
      %c0_76 = arith.constant 0 : index
      %304 = vector.load %arg6[%c0_75, %c0_76] : memref<1x128xf32, #tpu.memory_space<vmem>>, vector<1x128xf32>
      %305 = vector.shape_cast %304 : vector<1x128xf32> to vector<1x128xf32>
      %306 = vector.broadcast %305 : vector<1x128xf32> to vector<8x128xf32>
      %c0_77 = arith.constant 0 : index
      %c0_78 = arith.constant 0 : index
      %307 = vector.load %arg10[%c0_77, %c0_78] : memref<8x128xf32, #tpu.memory_space<vmem>>, vector<8x128xf32>
      tpu.vector_store %arg10[%c0_77, %c0_78], %306 {strides = array<i32>} : memref<8x128xf32, #tpu.memory_space<vmem>>, vector<8x128xf32>,
      %c0_79 = arith.constant 0 : index
      %c0_80 = arith.constant 0 : index
      %308 = vector.load %arg7[%c0_79, %c0_80] : memref<1x128xf32, #tpu.memory_space<vmem>>, vector<1x128xf32>
      %309 = vector.shape_cast %308 : vector<1x128xf32> to vector<1x128xf32>
      %310 = vector.broadcast %309 : vector<1x128xf32> to vector<8x128xf32>
      %c0_81 = arith.constant 0 : index
      %c0_82 = arith.constant 0 : index
      %311 = vector.load %arg11[%c0_81, %c0_82] : memref<8x128xf32, #tpu.memory_space<vmem>>, vector<8x128xf32>
      tpu.vector_store %arg11[%c0_81, %c0_82], %310 {strides = array<i32>} : memref<8x128xf32, #tpu.memory_space<vmem>>, vector<8x128xf32>,
    } else {
    }
    %c0 = arith.constant 0 : index
    %c0_1 = arith.constant 0 : index
    %3 = vector.load %arg2[%c0, %c0_1] : memref<64x16xbf16, #tpu.memory_space<vmem>>, vector<64x16xbf16>
    %c0_2 = arith.constant 0 : index
    %c0_3 = arith.constant 0 : index
    %4 = vector.load %arg3[%c0_2, %c0_3] : memref<16x512xbf16, #tpu.memory_space<vmem>>, vector<16x512xbf16>
    %cst = arith.constant dense<0.000000e+00> : vector<64x512xf32>
    %5 = tpu.matmul %3, %4, %cst {dimension_numbers = #tpu.dot_dimension_numbers<[1], [0], [0], [1], [0, 0, 1, 1], [], []>} : vector<64x16xbf16>, vector<16x512xbf16>, vector<64x512xf32> -> vector<64x512xf32>
    %c0_4 = arith.constant 0 : index
    %c0_5 = arith.constant 0 : index
    %6 = vector.load %arg4[%c0_4, %c0_5] : memref<1x512xf32, #tpu.memory_space<vmem>>, vector<1x512xf32>
    %7 = vector.broadcast %6 : vector<1x512xf32> to vector<64x512xf32>
    %8 = arith.addf %5, %7 : vector<64x512xf32>
    %9 = arith.truncf %8 : vector<64x512xf32> to vector<64x512xbf16>
    %c0_6 = arith.constant 0 : index
    %c0_7 = arith.constant 0 : index
    %10 = vector.load %arg9[%c0_6, %c0_7] : memref<64x512xbf16, #tpu.memory_space<vmem>>, vector<64x512xbf16>
    tpu.vector_store %arg9[%c0_6, %c0_7], %9 {strides = array<i32>} : memref<64x512xbf16, #tpu.memory_space<vmem>>, vector<64x512xbf16>,
    %c0_8 = arith.constant 0 : index
    %c0_9 = arith.constant 0 : index
    %11 = vector.load %arg5[%c0_8, %c0_9] : memref<128x512xbf16, #tpu.memory_space<vmem>>, vector<128x512xbf16>
    %c0_10 = arith.constant 0 : index
    %c0_11 = arith.constant 0 : index
    %12 = vector.load %arg10[%c0_10, %c0_11] : memref<8x128xf32, #tpu.memory_space<vmem>>, vector<8x128xf32>
    %c0_12 = arith.constant 0 : index
    %c0_13 = arith.constant 0 : index
    %13 = vector.load %arg11[%c0_12, %c0_13] : memref<8x128xf32, #tpu.memory_space<vmem>>, vector<8x128xf32>
    %c0_i32_14 = arith.constant 0 : i32
    %c8_i32 = arith.constant 8 : i32
    %14 = arith.muli %c0_i32_14, %c8_i32 : i32
    %15 = tpu.assume_multiple %14, 8 : i32
    %16 = arith.index_cast %15 : i32 to index
    %c0_15 = arith.constant 0 : index
    %17 = vector.load %arg9[%16, %c0_15] : memref<64x512xbf16, #tpu.memory_space<vmem>>, vector<8x512xbf16>
    %18 = arith.extf %17 : vector<8x512xbf16> to vector<8x512xf32>
    %19 = arith.truncf %12 : vector<8x128xf32> to vector<8x128xbf16>
    %cst_16 = arith.constant dense<0.000000e+00> : vector<8x512xf32>
    %20 = tpu.matmul %19, %11, %cst_16 {dimension_numbers = #tpu.dot_dimension_numbers<[1], [0], [0], [1], [0, 0, 1, 1], [], []>} : vector<8x128xbf16>, vector<128x512xbf16>, vector<8x512xf32> -> vector<8x512xf32>
    %21 = arith.addf %18, %20 : vector<8x512xf32>
    %22 = vector.extract_strided_slice %21 {offsets = [0, 0], sizes = [8, 128], strides = [1, 1]} : vector<8x512xf32> to vector<8x128xf32>
    %23 = arith.negf %22 : vector<8x128xf32>
    %24 = math.exp %23 : vector<8x128xf32>
    %cst_17 = arith.constant 1.000000e+00 : f32
    %25 = vector.broadcast %cst_17 : f32 to vector<8x128xf32>
    %26 = arith.addf %25, %24 : vector<8x128xf32>
    %27 = arith.divf %25, %26 : vector<8x128xf32>
    %28 = vector.extract_strided_slice %21 {offsets = [0, 128], sizes = [8, 128], strides = [1, 1]} : vector<8x512xf32> to vector<8x128xf32>
    %29 = arith.negf %28 : vector<8x128xf32>
    %30 = math.exp %29 : vector<8x128xf32>
    %cst_18 = arith.constant 1.000000e+00 : f32
    %31 = vector.broadcast %cst_18 : f32 to vector<8x128xf32>
    %32 = arith.addf %31, %30 : vector<8x128xf32>
    %33 = arith.divf %31, %32 : vector<8x128xf32>
    %34 = vector.extract_strided_slice %21 {offsets = [0, 256], sizes = [8, 128], strides = [1, 1]} : vector<8x512xf32> to vector<8x128xf32>
    %35 = math.tanh %34 : vector<8x128xf32>
    %36 = vector.extract_strided_slice %21 {offsets = [0, 384], sizes = [8, 128], strides = [1, 1]} : vector<8x512xf32> to vector<8x128xf32>
    %37 = arith.negf %36 : vector<8x128xf32>
    %38 = math.exp %37 : vector<8x128xf32>
    %cst_19 = arith.constant 1.000000e+00 : f32
    %39 = vector.broadcast %cst_19 : f32 to vector<8x128xf32>
    %40 = arith.addf %39, %38 : vector<8x128xf32>
    %41 = arith.divf %39, %40 : vector<8x128xf32>
    %42 = arith.mulf %33, %13 : vector<8x128xf32>
    %43 = arith.mulf %27, %35 : vector<8x128xf32>
    %44 = arith.addf %42, %43 : vector<8x128xf32>
    %45 = math.tanh %44 : vector<8x128xf32>
    %46 = arith.mulf %41, %45 : vector<8x128xf32>
    %47 = arith.truncf %46 : vector<8x128xf32> to vector<8x128xbf16>
    %48 = arith.index_cast %15 : i32 to index
    %c0_20 = arith.constant 0 : index
    %49 = vector.load %arg8[%48, %c0_20] : memref<64x128xbf16, #tpu.memory_space<vmem>>, vector<8x128xbf16>
    tpu.vector_store %arg8[%48, %c0_20], %47 {strides = array<i32>} : memref<64x128xbf16, #tpu.memory_space<vmem>>, vector<8x128xbf16>,
    %c1_i32 = arith.constant 1 : i32
    %c8_i32_21 = arith.constant 8 : i32
    %50 = arith.muli %c1_i32, %c8_i32_21 : i32
    %51 = tpu.assume_multiple %50, 8 : i32
    %52 = arith.index_cast %51 : i32 to index
    %c0_22 = arith.constant 0 : index
    %53 = vector.load %arg9[%52, %c0_22] : memref<64x512xbf16, #tpu.memory_space<vmem>>, vector<8x512xbf16>
    %54 = arith.extf %53 : vector<8x512xbf16> to vector<8x512xf32>
    %55 = arith.truncf %46 : vector<8x128xf32> to vector<8x128xbf16>
    %cst_23 = arith.constant dense<0.000000e+00> : vector<8x512xf32>
    %56 = tpu.matmul %55, %11, %cst_23 {dimension_numbers = #tpu.dot_dimension_numbers<[1], [0], [0], [1], [0, 0, 1, 1], [], []>} : vector<8x128xbf16>, vector<128x512xbf16>, vector<8x512xf32> -> vector<8x512xf32>
    %57 = arith.addf %54, %56 : vector<8x512xf32>
    %58 = vector.extract_strided_slice %57 {offsets = [0, 0], sizes = [8, 128], strides = [1, 1]} : vector<8x512xf32> to vector<8x128xf32>
    %59 = arith.negf %58 : vector<8x128xf32>
    %60 = math.exp %59 : vector<8x128xf32>
    %cst_24 = arith.constant 1.000000e+00 : f32
    %61 = vector.broadcast %cst_24 : f32 to vector<8x128xf32>
    %62 = arith.addf %61, %60 : vector<8x128xf32>
    %63 = arith.divf %61, %62 : vector<8x128xf32>
    %64 = vector.extract_strided_slice %57 {offsets = [0, 128], sizes = [8, 128], strides = [1, 1]} : vector<8x512xf32> to vector<8x128xf32>
    %65 = arith.negf %64 : vector<8x128xf32>
    %66 = math.exp %65 : vector<8x128xf32>
    %cst_25 = arith.constant 1.000000e+00 : f32
    %67 = vector.broadcast %cst_25 : f32 to vector<8x128xf32>
    %68 = arith.addf %67, %66 : vector<8x128xf32>
    %69 = arith.divf %67, %68 : vector<8x128xf32>
    %70 = vector.extract_strided_slice %57 {offsets = [0, 256], sizes = [8, 128], strides = [1, 1]} : vector<8x512xf32> to vector<8x128xf32>
    %71 = math.tanh %70 : vector<8x128xf32>
    %72 = vector.extract_strided_slice %57 {offsets = [0, 384], sizes = [8, 128], strides = [1, 1]} : vector<8x512xf32> to vector<8x128xf32>
    %73 = arith.negf %72 : vector<8x128xf32>
    %74 = math.exp %73 : vector<8x128xf32>
    %cst_26 = arith.constant 1.000000e+00 : f32
    %75 = vector.broadcast %cst_26 : f32 to vector<8x128xf32>
    %76 = arith.addf %75, %74 : vector<8x128xf32>
    %77 = arith.divf %75, %76 : vector<8x128xf32>
    %78 = arith.mulf %69, %44 : vector<8x128xf32>
    %79 = arith.mulf %63, %71 : vector<8x128xf32>
    %80 = arith.addf %78, %79 : vector<8x128xf32>
    %81 = math.tanh %80 : vector<8x128xf32>
    %82 = arith.mulf %77, %81 : vector<8x128xf32>
    %83 = arith.truncf %82 : vector<8x128xf32> to vector<8x128xbf16>
    %84 = arith.index_cast %51 : i32 to index
    %c0_27 = arith.constant 0 : index
    %85 = vector.load %arg8[%84, %c0_27] : memref<64x128xbf16, #tpu.memory_space<vmem>>, vector<8x128xbf16>
    tpu.vector_store %arg8[%84, %c0_27], %83 {strides = array<i32>} : memref<64x128xbf16, #tpu.memory_space<vmem>>, vector<8x128xbf16>,
    %c2_i32 = arith.constant 2 : i32
    %c8_i32_28 = arith.constant 8 : i32
    %86 = arith.muli %c2_i32, %c8_i32_28 : i32
    %87 = tpu.assume_multiple %86, 8 : i32
    %88 = arith.index_cast %87 : i32 to index
    %c0_29 = arith.constant 0 : index
    %89 = vector.load %arg9[%88, %c0_29] : memref<64x512xbf16, #tpu.memory_space<vmem>>, vector<8x512xbf16>
    %90 = arith.extf %89 : vector<8x512xbf16> to vector<8x512xf32>
    %91 = arith.truncf %82 : vector<8x128xf32> to vector<8x128xbf16>
    %cst_30 = arith.constant dense<0.000000e+00> : vector<8x512xf32>
    %92 = tpu.matmul %91, %11, %cst_30 {dimension_numbers = #tpu.dot_dimension_numbers<[1], [0], [0], [1], [0, 0, 1, 1], [], []>} : vector<8x128xbf16>, vector<128x512xbf16>, vector<8x512xf32> -> vector<8x512xf32>
    %93 = arith.addf %90, %92 : vector<8x512xf32>
    %94 = vector.extract_strided_slice %93 {offsets = [0, 0], sizes = [8, 128], strides = [1, 1]} : vector<8x512xf32> to vector<8x128xf32>
    %95 = arith.negf %94 : vector<8x128xf32>
    %96 = math.exp %95 : vector<8x128xf32>
    %cst_31 = arith.constant 1.000000e+00 : f32
    %97 = vector.broadcast %cst_31 : f32 to vector<8x128xf32>
    %98 = arith.addf %97, %96 : vector<8x128xf32>
    %99 = arith.divf %97, %98 : vector<8x128xf32>
    %100 = vector.extract_strided_slice %93 {offsets = [0, 128], sizes = [8, 128], strides = [1, 1]} : vector<8x512xf32> to vector<8x128xf32>
    %101 = arith.negf %100 : vector<8x128xf32>
    %102 = math.exp %101 : vector<8x128xf32>
    %cst_32 = arith.constant 1.000000e+00 : f32
    %103 = vector.broadcast %cst_32 : f32 to vector<8x128xf32>
    %104 = arith.addf %103, %102 : vector<8x128xf32>
    %105 = arith.divf %103, %104 : vector<8x128xf32>
    %106 = vector.extract_strided_slice %93 {offsets = [0, 256], sizes = [8, 128], strides = [1, 1]} : vector<8x512xf32> to vector<8x128xf32>
    %107 = math.tanh %106 : vector<8x128xf32>
    %108 = vector.extract_strided_slice %93 {offsets = [0, 384], sizes = [8, 128], strides = [1, 1]} : vector<8x512xf32> to vector<8x128xf32>
    %109 = arith.negf %108 : vector<8x128xf32>
    %110 = math.exp %109 : vector<8x128xf32>
    %cst_33 = arith.constant 1.000000e+00 : f32
    %111 = vector.broadcast %cst_33 : f32 to vector<8x128xf32>
    %112 = arith.addf %111, %110 : vector<8x128xf32>
    %113 = arith.divf %111, %112 : vector<8x128xf32>
    %114 = arith.mulf %105, %80 : vector<8x128xf32>
    %115 = arith.mulf %99, %107 : vector<8x128xf32>
    %116 = arith.addf %114, %115 : vector<8x128xf32>
    %117 = math.tanh %116 : vector<8x128xf32>
    %118 = arith.mulf %113, %117 : vector<8x128xf32>
    %119 = arith.truncf %118 : vector<8x128xf32> to vector<8x128xbf16>
    %120 = arith.index_cast %87 : i32 to index
    %c0_34 = arith.constant 0 : index
    %121 = vector.load %arg8[%120, %c0_34] : memref<64x128xbf16, #tpu.memory_space<vmem>>, vector<8x128xbf16>
    tpu.vector_store %arg8[%120, %c0_34], %119 {strides = array<i32>} : memref<64x128xbf16, #tpu.memory_space<vmem>>, vector<8x128xbf16>,
    %c3_i32 = arith.constant 3 : i32
    %c8_i32_35 = arith.constant 8 : i32
    %122 = arith.muli %c3_i32, %c8_i32_35 : i32
    %123 = tpu.assume_multiple %122, 8 : i32
    %124 = arith.index_cast %123 : i32 to index
    %c0_36 = arith.constant 0 : index
    %125 = vector.load %arg9[%124, %c0_36] : memref<64x512xbf16, #tpu.memory_space<vmem>>, vector<8x512xbf16>
    %126 = arith.extf %125 : vector<8x512xbf16> to vector<8x512xf32>
    %127 = arith.truncf %118 : vector<8x128xf32> to vector<8x128xbf16>
    %cst_37 = arith.constant dense<0.000000e+00> : vector<8x512xf32>
    %128 = tpu.matmul %127, %11, %cst_37 {dimension_numbers = #tpu.dot_dimension_numbers<[1], [0], [0], [1], [0, 0, 1, 1], [], []>} : vector<8x128xbf16>, vector<128x512xbf16>, vector<8x512xf32> -> vector<8x512xf32>
    %129 = arith.addf %126, %128 : vector<8x512xf32>
    %130 = vector.extract_strided_slice %129 {offsets = [0, 0], sizes = [8, 128], strides = [1, 1]} : vector<8x512xf32> to vector<8x128xf32>
    %131 = arith.negf %130 : vector<8x128xf32>
    %132 = math.exp %131 : vector<8x128xf32>
    %cst_38 = arith.constant 1.000000e+00 : f32
    %133 = vector.broadcast %cst_38 : f32 to vector<8x128xf32>
    %134 = arith.addf %133, %132 : vector<8x128xf32>
    %135 = arith.divf %133, %134 : vector<8x128xf32>
    %136 = vector.extract_strided_slice %129 {offsets = [0, 128], sizes = [8, 128], strides = [1, 1]} : vector<8x512xf32> to vector<8x128xf32>
    %137 = arith.negf %136 : vector<8x128xf32>
    %138 = math.exp %137 : vector<8x128xf32>
    %cst_39 = arith.constant 1.000000e+00 : f32
    %139 = vector.broadcast %cst_39 : f32 to vector<8x128xf32>
    %140 = arith.addf %139, %138 : vector<8x128xf32>
    %141 = arith.divf %139, %140 : vector<8x128xf32>
    %142 = vector.extract_strided_slice %129 {offsets = [0, 256], sizes = [8, 128], strides = [1, 1]} : vector<8x512xf32> to vector<8x128xf32>
    %143 = math.tanh %142 : vector<8x128xf32>
    %144 = vector.extract_strided_slice %129 {offsets = [0, 384], sizes = [8, 128], strides = [1, 1]} : vector<8x512xf32> to vector<8x128xf32>
    %145 = arith.negf %144 : vector<8x128xf32>
    %146 = math.exp %145 : vector<8x128xf32>
    %cst_40 = arith.constant 1.000000e+00 : f32
    %147 = vector.broadcast %cst_40 : f32 to vector<8x128xf32>
    %148 = arith.addf %147, %146 : vector<8x128xf32>
    %149 = arith.divf %147, %148 : vector<8x128xf32>
    %150 = arith.mulf %141, %116 : vector<8x128xf32>
    %151 = arith.mulf %135, %143 : vector<8x128xf32>
    %152 = arith.addf %150, %151 : vector<8x128xf32>
    %153 = math.tanh %152 : vector<8x128xf32>
    %154 = arith.mulf %149, %153 : vector<8x128xf32>
    %155 = arith.truncf %154 : vector<8x128xf32> to vector<8x128xbf16>
    %156 = arith.index_cast %123 : i32 to index
    %c0_41 = arith.constant 0 : index
    %157 = vector.load %arg8[%156, %c0_41] : memref<64x128xbf16, #tpu.memory_space<vmem>>, vector<8x128xbf16>
    tpu.vector_store %arg8[%156, %c0_41], %155 {strides = array<i32>} : memref<64x128xbf16, #tpu.memory_space<vmem>>, vector<8x128xbf16>,
    %c4_i32 = arith.constant 4 : i32
    %c8_i32_42 = arith.constant 8 : i32
    %158 = arith.muli %c4_i32, %c8_i32_42 : i32
    %159 = tpu.assume_multiple %158, 8 : i32
    %160 = arith.index_cast %159 : i32 to index
    %c0_43 = arith.constant 0 : index
    %161 = vector.load %arg9[%160, %c0_43] : memref<64x512xbf16, #tpu.memory_space<vmem>>, vector<8x512xbf16>
    %162 = arith.extf %161 : vector<8x512xbf16> to vector<8x512xf32>
    %163 = arith.truncf %154 : vector<8x128xf32> to vector<8x128xbf16>
    %cst_44 = arith.constant dense<0.000000e+00> : vector<8x512xf32>
    %164 = tpu.matmul %163, %11, %cst_44 {dimension_numbers = #tpu.dot_dimension_numbers<[1], [0], [0], [1], [0, 0, 1, 1], [], []>} : vector<8x128xbf16>, vector<128x512xbf16>, vector<8x512xf32> -> vector<8x512xf32>
    %165 = arith.addf %162, %164 : vector<8x512xf32>
    %166 = vector.extract_strided_slice %165 {offsets = [0, 0], sizes = [8, 128], strides = [1, 1]} : vector<8x512xf32> to vector<8x128xf32>
    %167 = arith.negf %166 : vector<8x128xf32>
    %168 = math.exp %167 : vector<8x128xf32>
    %cst_45 = arith.constant 1.000000e+00 : f32
    %169 = vector.broadcast %cst_45 : f32 to vector<8x128xf32>
    %170 = arith.addf %169, %168 : vector<8x128xf32>
    %171 = arith.divf %169, %170 : vector<8x128xf32>
    %172 = vector.extract_strided_slice %165 {offsets = [0, 128], sizes = [8, 128], strides = [1, 1]} : vector<8x512xf32> to vector<8x128xf32>
    %173 = arith.negf %172 : vector<8x128xf32>
    %174 = math.exp %173 : vector<8x128xf32>
    %cst_46 = arith.constant 1.000000e+00 : f32
    %175 = vector.broadcast %cst_46 : f32 to vector<8x128xf32>
    %176 = arith.addf %175, %174 : vector<8x128xf32>
    %177 = arith.divf %175, %176 : vector<8x128xf32>
    %178 = vector.extract_strided_slice %165 {offsets = [0, 256], sizes = [8, 128], strides = [1, 1]} : vector<8x512xf32> to vector<8x128xf32>
    %179 = math.tanh %178 : vector<8x128xf32>
    %180 = vector.extract_strided_slice %165 {offsets = [0, 384], sizes = [8, 128], strides = [1, 1]} : vector<8x512xf32> to vector<8x128xf32>
    %181 = arith.negf %180 : vector<8x128xf32>
    %182 = math.exp %181 : vector<8x128xf32>
    %cst_47 = arith.constant 1.000000e+00 : f32
    %183 = vector.broadcast %cst_47 : f32 to vector<8x128xf32>
    %184 = arith.addf %183, %182 : vector<8x128xf32>
    %185 = arith.divf %183, %184 : vector<8x128xf32>
    %186 = arith.mulf %177, %152 : vector<8x128xf32>
    %187 = arith.mulf %171, %179 : vector<8x128xf32>
    %188 = arith.addf %186, %187 : vector<8x128xf32>
    %189 = math.tanh %188 : vector<8x128xf32>
    %190 = arith.mulf %185, %189 : vector<8x128xf32>
    %191 = arith.truncf %190 : vector<8x128xf32> to vector<8x128xbf16>
    %192 = arith.index_cast %159 : i32 to index
    %c0_48 = arith.constant 0 : index
    %193 = vector.load %arg8[%192, %c0_48] : memref<64x128xbf16, #tpu.memory_space<vmem>>, vector<8x128xbf16>
    tpu.vector_store %arg8[%192, %c0_48], %191 {strides = array<i32>} : memref<64x128xbf16, #tpu.memory_space<vmem>>, vector<8x128xbf16>,
    %c5_i32 = arith.constant 5 : i32
    %c8_i32_49 = arith.constant 8 : i32
    %194 = arith.muli %c5_i32, %c8_i32_49 : i32
    %195 = tpu.assume_multiple %194, 8 : i32
    %196 = arith.index_cast %195 : i32 to index
    %c0_50 = arith.constant 0 : index
    %197 = vector.load %arg9[%196, %c0_50] : memref<64x512xbf16, #tpu.memory_space<vmem>>, vector<8x512xbf16>
    %198 = arith.extf %197 : vector<8x512xbf16> to vector<8x512xf32>
    %199 = arith.truncf %190 : vector<8x128xf32> to vector<8x128xbf16>
    %cst_51 = arith.constant dense<0.000000e+00> : vector<8x512xf32>
    %200 = tpu.matmul %199, %11, %cst_51 {dimension_numbers = #tpu.dot_dimension_numbers<[1], [0], [0], [1], [0, 0, 1, 1], [], []>} : vector<8x128xbf16>, vector<128x512xbf16>, vector<8x512xf32> -> vector<8x512xf32>
    %201 = arith.addf %198, %200 : vector<8x512xf32>
    %202 = vector.extract_strided_slice %201 {offsets = [0, 0], sizes = [8, 128], strides = [1, 1]} : vector<8x512xf32> to vector<8x128xf32>
    %203 = arith.negf %202 : vector<8x128xf32>
    %204 = math.exp %203 : vector<8x128xf32>
    %cst_52 = arith.constant 1.000000e+00 : f32
    %205 = vector.broadcast %cst_52 : f32 to vector<8x128xf32>
    %206 = arith.addf %205, %204 : vector<8x128xf32>
    %207 = arith.divf %205, %206 : vector<8x128xf32>
    %208 = vector.extract_strided_slice %201 {offsets = [0, 128], sizes = [8, 128], strides = [1, 1]} : vector<8x512xf32> to vector<8x128xf32>
    %209 = arith.negf %208 : vector<8x128xf32>
    %210 = math.exp %209 : vector<8x128xf32>
    %cst_53 = arith.constant 1.000000e+00 : f32
    %211 = vector.broadcast %cst_53 : f32 to vector<8x128xf32>
    %212 = arith.addf %211, %210 : vector<8x128xf32>
    %213 = arith.divf %211, %212 : vector<8x128xf32>
    %214 = vector.extract_strided_slice %201 {offsets = [0, 256], sizes = [8, 128], strides = [1, 1]} : vector<8x512xf32> to vector<8x128xf32>
    %215 = math.tanh %214 : vector<8x128xf32>
    %216 = vector.extract_strided_slice %201 {offsets = [0, 384], sizes = [8, 128], strides = [1, 1]} : vector<8x512xf32> to vector<8x128xf32>
    %217 = arith.negf %216 : vector<8x128xf32>
    %218 = math.exp %217 : vector<8x128xf32>
    %cst_54 = arith.constant 1.000000e+00 : f32
    %219 = vector.broadcast %cst_54 : f32 to vector<8x128xf32>
    %220 = arith.addf %219, %218 : vector<8x128xf32>
    %221 = arith.divf %219, %220 : vector<8x128xf32>
    %222 = arith.mulf %213, %188 : vector<8x128xf32>
    %223 = arith.mulf %207, %215 : vector<8x128xf32>
    %224 = arith.addf %222, %223 : vector<8x128xf32>
    %225 = math.tanh %224 : vector<8x128xf32>
    %226 = arith.mulf %221, %225 : vector<8x128xf32>
    %227 = arith.truncf %226 : vector<8x128xf32> to vector<8x128xbf16>
    %228 = arith.index_cast %195 : i32 to index
    %c0_55 = arith.constant 0 : index
    %229 = vector.load %arg8[%228, %c0_55] : memref<64x128xbf16, #tpu.memory_space<vmem>>, vector<8x128xbf16>
    tpu.vector_store %arg8[%228, %c0_55], %227 {strides = array<i32>} : memref<64x128xbf16, #tpu.memory_space<vmem>>, vector<8x128xbf16>,
    %c6_i32 = arith.constant 6 : i32
    %c8_i32_56 = arith.constant 8 : i32
    %230 = arith.muli %c6_i32, %c8_i32_56 : i32
    %231 = tpu.assume_multiple %230, 8 : i32
    %232 = arith.index_cast %231 : i32 to index
    %c0_57 = arith.constant 0 : index
    %233 = vector.load %arg9[%232, %c0_57] : memref<64x512xbf16, #tpu.memory_space<vmem>>, vector<8x512xbf16>
    %234 = arith.extf %233 : vector<8x512xbf16> to vector<8x512xf32>
    %235 = arith.truncf %226 : vector<8x128xf32> to vector<8x128xbf16>
    %cst_58 = arith.constant dense<0.000000e+00> : vector<8x512xf32>
    %236 = tpu.matmul %235, %11, %cst_58 {dimension_numbers = #tpu.dot_dimension_numbers<[1], [0], [0], [1], [0, 0, 1, 1], [], []>} : vector<8x128xbf16>, vector<128x512xbf16>, vector<8x512xf32> -> vector<8x512xf32>
    %237 = arith.addf %234, %236 : vector<8x512xf32>
    %238 = vector.extract_strided_slice %237 {offsets = [0, 0], sizes = [8, 128], strides = [1, 1]} : vector<8x512xf32> to vector<8x128xf32>
    %239 = arith.negf %238 : vector<8x128xf32>
    %240 = math.exp %239 : vector<8x128xf32>
    %cst_59 = arith.constant 1.000000e+00 : f32
    %241 = vector.broadcast %cst_59 : f32 to vector<8x128xf32>
    %242 = arith.addf %241, %240 : vector<8x128xf32>
    %243 = arith.divf %241, %242 : vector<8x128xf32>
    %244 = vector.extract_strided_slice %237 {offsets = [0, 128], sizes = [8, 128], strides = [1, 1]} : vector<8x512xf32> to vector<8x128xf32>
    %245 = arith.negf %244 : vector<8x128xf32>
    %246 = math.exp %245 : vector<8x128xf32>
    %cst_60 = arith.constant 1.000000e+00 : f32
    %247 = vector.broadcast %cst_60 : f32 to vector<8x128xf32>
    %248 = arith.addf %247, %246 : vector<8x128xf32>
    %249 = arith.divf %247, %248 : vector<8x128xf32>
    %250 = vector.extract_strided_slice %237 {offsets = [0, 256], sizes = [8, 128], strides = [1, 1]} : vector<8x512xf32> to vector<8x128xf32>
    %251 = math.tanh %250 : vector<8x128xf32>
    %252 = vector.extract_strided_slice %237 {offsets = [0, 384], sizes = [8, 128], strides = [1, 1]} : vector<8x512xf32> to vector<8x128xf32>
    %253 = arith.negf %252 : vector<8x128xf32>
    %254 = math.exp %253 : vector<8x128xf32>
    %cst_61 = arith.constant 1.000000e+00 : f32
    %255 = vector.broadcast %cst_61 : f32 to vector<8x128xf32>
    %256 = arith.addf %255, %254 : vector<8x128xf32>
    %257 = arith.divf %255, %256 : vector<8x128xf32>
    %258 = arith.mulf %249, %224 : vector<8x128xf32>
    %259 = arith.mulf %243, %251 : vector<8x128xf32>
    %260 = arith.addf %258, %259 : vector<8x128xf32>
    %261 = math.tanh %260 : vector<8x128xf32>
    %262 = arith.mulf %257, %261 : vector<8x128xf32>
    %263 = arith.truncf %262 : vector<8x128xf32> to vector<8x128xbf16>
    %264 = arith.index_cast %231 : i32 to index
    %c0_62 = arith.constant 0 : index
    %265 = vector.load %arg8[%264, %c0_62] : memref<64x128xbf16, #tpu.memory_space<vmem>>, vector<8x128xbf16>
    tpu.vector_store %arg8[%264, %c0_62], %263 {strides = array<i32>} : memref<64x128xbf16, #tpu.memory_space<vmem>>, vector<8x128xbf16>,
    %c7_i32 = arith.constant 7 : i32
    %c8_i32_63 = arith.constant 8 : i32
    %266 = arith.muli %c7_i32, %c8_i32_63 : i32
    %267 = tpu.assume_multiple %266, 8 : i32
    %268 = arith.index_cast %267 : i32 to index
    %c0_64 = arith.constant 0 : index
    %269 = vector.load %arg9[%268, %c0_64] : memref<64x512xbf16, #tpu.memory_space<vmem>>, vector<8x512xbf16>
    %270 = arith.extf %269 : vector<8x512xbf16> to vector<8x512xf32>
    %271 = arith.truncf %262 : vector<8x128xf32> to vector<8x128xbf16>
    %cst_65 = arith.constant dense<0.000000e+00> : vector<8x512xf32>
    %272 = tpu.matmul %271, %11, %cst_65 {dimension_numbers = #tpu.dot_dimension_numbers<[1], [0], [0], [1], [0, 0, 1, 1], [], []>} : vector<8x128xbf16>, vector<128x512xbf16>, vector<8x512xf32> -> vector<8x512xf32>
    %273 = arith.addf %270, %272 : vector<8x512xf32>
    %274 = vector.extract_strided_slice %273 {offsets = [0, 0], sizes = [8, 128], strides = [1, 1]} : vector<8x512xf32> to vector<8x128xf32>
    %275 = arith.negf %274 : vector<8x128xf32>
    %276 = math.exp %275 : vector<8x128xf32>
    %cst_66 = arith.constant 1.000000e+00 : f32
    %277 = vector.broadcast %cst_66 : f32 to vector<8x128xf32>
    %278 = arith.addf %277, %276 : vector<8x128xf32>
    %279 = arith.divf %277, %278 : vector<8x128xf32>
    %280 = vector.extract_strided_slice %273 {offsets = [0, 128], sizes = [8, 128], strides = [1, 1]} : vector<8x512xf32> to vector<8x128xf32>
    %281 = arith.negf %280 : vector<8x128xf32>
    %282 = math.exp %281 : vector<8x128xf32>
    %cst_67 = arith.constant 1.000000e+00 : f32
    %283 = vector.broadcast %cst_67 : f32 to vector<8x128xf32>
    %284 = arith.addf %283, %282 : vector<8x128xf32>
    %285 = arith.divf %283, %284 : vector<8x128xf32>
    %286 = vector.extract_strided_slice %273 {offsets = [0, 256], sizes = [8, 128], strides = [1, 1]} : vector<8x512xf32> to vector<8x128xf32>
    %287 = math.tanh %286 : vector<8x128xf32>
    %288 = vector.extract_strided_slice %273 {offsets = [0, 384], sizes = [8, 128], strides = [1, 1]} : vector<8x512xf32> to vector<8x128xf32>
    %289 = arith.negf %288 : vector<8x128xf32>
    %290 = math.exp %289 : vector<8x128xf32>
    %cst_68 = arith.constant 1.000000e+00 : f32
    %291 = vector.broadcast %cst_68 : f32 to vector<8x128xf32>
    %292 = arith.addf %291, %290 : vector<8x128xf32>
    %293 = arith.divf %291, %292 : vector<8x128xf32>
    %294 = arith.mulf %285, %260 : vector<8x128xf32>
    %295 = arith.mulf %279, %287 : vector<8x128xf32>
    %296 = arith.addf %294, %295 : vector<8x128xf32>
    %297 = math.tanh %296 : vector<8x128xf32>
    %298 = arith.mulf %293, %297 : vector<8x128xf32>
    %299 = arith.truncf %298 : vector<8x128xf32> to vector<8x128xbf16>
    %300 = arith.index_cast %267 : i32 to index
    %c0_69 = arith.constant 0 : index
    %301 = vector.load %arg8[%300, %c0_69] : memref<64x128xbf16, #tpu.memory_space<vmem>>, vector<8x128xbf16>
    tpu.vector_store %arg8[%300, %c0_69], %299 {strides = array<i32>} : memref<64x128xbf16, #tpu.memory_space<vmem>>, vector<8x128xbf16>,
    %c8_i32_70 = arith.constant 8 : i32
    %c0_71 = arith.constant 0 : index
    %c0_72 = arith.constant 0 : index
    %302 = vector.load %arg10[%c0_71, %c0_72] : memref<8x128xf32, #tpu.memory_space<vmem>>, vector<8x128xf32>
    tpu.vector_store %arg10[%c0_71, %c0_72], %298 {strides = array<i32>} : memref<8x128xf32, #tpu.memory_space<vmem>>, vector<8x128xf32>,
    %c0_73 = arith.constant 0 : index
    %c0_74 = arith.constant 0 : index
    %303 = vector.load %arg11[%c0_73, %c0_74] : memref<8x128xf32, #tpu.memory_space<vmem>>, vector<8x128xf32>
    tpu.vector_store %arg11[%c0_73, %c0_74], %296 {strides = array<i32>} : memref<8x128xf32, #tpu.memory_space<vmem>>, vector<8x128xf32>,
    return
  }
  func.func @transform_0(%arg0: i32, %arg1: i32) -> (i32, i32) {
    %c1_i32 = arith.constant 1 : i32
    %0 = arith.muli %arg0, %c1_i32 : i32
    %1 = arith.addi %0, %arg1 : i32
    %c0_i32 = arith.constant 0 : i32
    %c0_i32_0 = arith.constant 0 : i32
    return %1, %c0_i32 : i32, i32
  }
  func.func @transform_1(%arg0: i32, %arg1: i32) -> (i32, i32) {
    %c0_i32 = arith.constant 0 : i32
    %c0_i32_0 = arith.constant 0 : i32
    %c0_i32_1 = arith.constant 0 : i32
    return %c0_i32, %c0_i32_0 : i32, i32
  }
  func.func @transform_2(%arg0: i32, %arg1: i32) -> (i32, i32) {
    %c0_i32 = arith.constant 0 : i32
    %c0_i32_0 = arith.constant 0 : i32
    %c0_i32_1 = arith.constant 0 : i32
    return %c0_i32, %c0_i32_0 : i32, i32
  }
  func.func @transform_3(%arg0: i32, %arg1: i32) -> (i32, i32) {
    %c0_i32 = arith.constant 0 : i32
    %c0_i32_0 = arith.constant 0 : i32
    %c0_i32_1 = arith.constant 0 : i32
    return %c0_i32, %c0_i32_0 : i32, i32
  }
  func.func @transform_4(%arg0: i32, %arg1: i32) -> (i32, i32) {
    %c0_i32 = arith.constant 0 : i32
    %c0_i32_0 = arith.constant 0 : i32
    %c0_i32_1 = arith.constant 0 : i32
    return %c0_i32, %c0_i32_0 : i32, i32
  }
  func.func @transform_5(%arg0: i32, %arg1: i32) -> (i32, i32) {
    %c0_i32 = arith.constant 0 : i32
    %c0_i32_0 = arith.constant 0 : i32
    %c0_i32_1 = arith.constant 0 : i32
    return %c0_i32, %c0_i32_0 : i32, i32
  }
  func.func @transform_6(%arg0: i32, %arg1: i32) -> (i32, i32) {
    %c1_i32 = arith.constant 1 : i32
    %0 = arith.muli %arg0, %c1_i32 : i32
    %1 = arith.addi %0, %arg1 : i32
    %c0_i32 = arith.constant 0 : i32
    %c0_i32_0 = arith.constant 0 : i32
    return %1, %c0_i32 : i32, i32
  }
}

</mosaic_0001>

<bundles_post_ra>
// kernel: model13_forward.1
= control target key start
LH: loop header
LB: loop body
LE: loop exit
PB: predicated region body
PF: predicated region fallthrough
CT: control target
= control target key end

     0   :  { %11 = vsyncpa [#allocation6], 0  ;;  %s2003_s24 = smov [#allocation5]   ;;  %s2004_s26 = smov 256   ;;  %s2585_s0 = inlined_call_operand.vmem [shape: bf16[64,16], index: 0, kind: input, shape index: {}]   ;;  %s2586_s1 = inlined_call_operand.vmem [shape: bf16[16,512], index: 1, kind: input, shape index: {}]   ;;  %s2587_s2 = inlined_call_operand.vmem [shape: f32[1,512], index: 2, kind: input, shape index: {}]   ;;  %s2588_s3 = inlined_call_operand.hbm [shape: bf16[128,512], index: 3, kind: input, shape index: {}]   ;;  %s2589_s4 = inlined_call_operand.vmem [shape: f32[1,128], index: 4, kind: input, shape index: {}]   ;;  %s2590_s5 = inlined_call_operand.vmem [shape: f32[1,128], index: 5, kind: input, shape index: {}]   ;;  %s2591_s6 = inlined_call_operand.vmem [shape: bf16[64,128], index: 6, kind: output, shape index: {}]  }
   0x1   :  { %s30_s23 = sshll.u32 %s2588_s3, 4  ;;  %s32_s25 = sshll.u32 %s2003_s24, 4  ;;  %s31_s23 = int_to_ptr.hbm [resolvable:$true] %s30_s23  ;;  %s33_s25 = int_to_ptr.vmem [resolvable:$true] %s32_s25 }
   0x2   :  { %s2005_s27 = smov 16  }
   0x3   :  { %38 = dma.hbm_to_vmem [thread:$0]  %s31_s23, 4096, %s33_s25, [#allocation6], %s2004_s26, %s2004_s26, %s2005_s27  }
   0x4   :  { %2001 = dma.done.wait [#allocation6], 4096  }
   0x5   :  { %2002 = vsyncadd [#allocation6], 4294963200  ;;  %v1615_v0 = vld [vmem:[%s2586_s1] sm:$0xf]  ;;  %v1810_v1 = vld [vmem:[%s2586_s1 + $0xc] sm:$0xf0] }
   0x6   :  { %v1808_v2 = vld [vmem:[%s2586_s1 + $0x4] sm:$0xf]  ;;  %v1616_v3 = vor.u32 %v1810_v1, %v1615_v0  ;;  %v1617_v4 = vld [vmem:[%s2586_s1 + $0x10] sm:$0xf0]  ;;  %v1623_v5 = vld [vmem:[%s2586_s1 + $0x8] sm:$0xf] }
   0x7   :  { %v1811_v6 = vld [vmem:[%s2586_s1 + $0x14] sm:$0xf0]  ;;  %v1620_v7 = vor.u32 %v1808_v2, %v1617_v4  ;;  %v1809_v9 = vld [vmem:[%s2586_s1 + $0xc] sm:$0xf]  ;;  %v1625_v10 = vld [vmem:[%s2586_s1 + $0x18] sm:$0xf0] }
   0x8   :  { %v1624_v8 = vor.u32 %v1811_v6, %v1623_v5  ;;  %v1804_v11 = vld [vmem:[%s2585_s0] sm:$0xff]  ;;  %vm152_vm0 = vcmask 130048   ;;  %172 = vmatpush.bf16.msra.mxu0 %v1616_v3  ;;  %v1628_v12 = vor.u32 %v1809_v9, %v1625_v10  ;;  %v1842_v14 = vld [vmem:[#allocation5 + $0xec] sm:$0xf0]  ;;  %v1761_v17 = vld [vmem:[#allocation5 + $0xf0] sm:$0xf0] }
   0x9   :  { %v1759_v13 = vld [vmem:[#allocation5 + $0xe0] sm:$0xf]  ;;  %v1840_v15 = vld [vmem:[#allocation5 + $0xe4] sm:$0xf]  ;;  %201 = vmatpush.bf16.msra.mxu1 %v1620_v7  ;;  %v1841_v18 = vld [vmem:[#allocation5 + $0xec] sm:$0xf] }
   0xa   :  { %230 = vmatpush.bf16.msra.mxu2 %v1624_v8  ;;  %v2071_v16 = vor.u32 %v1842_v14, %v1759_v13  ;;  %v1769_v19 = vld [vmem:[#allocation5 + $0xf8] sm:$0xf0]  ;;  %259 = vmatpush.bf16.msra.mxu3 %v1628_v12  ;;  %v2073_v20 = vor.u32 %v1840_v15, %v1761_v17  ;;  %v1743_v22 = vld [vmem:[#allocation5 + $0xc0] sm:$0xf]  ;;  %v1838_v23 = vld [vmem:[#allocation5 + $0xcc] sm:$0xf0] }
   0xb   :  { %v2075_v21 = vor.u32 %v1841_v18, %v1769_v19  ;;  %v1836_v24 = vld [vmem:[#allocation5 + $0xc4] sm:$0xf]  ;;  %1629 = vmatmul.msk.bf16.vlgmr.msra.gmra.mxu0 %vm152_vm0, %v1804_v11  ;;  %v1745_v25 = vld [vmem:[#allocation5 + $0xd0] sm:$0xf0]  ;;  %v1837_v26 = vld [vmem:[#allocation5 + $0xcc] sm:$0xf]  ;;  %v2082_v30 = vor.u32 %v1838_v23, %v1743_v22 }
   0xc   :  { %v1753_v27 = vld [vmem:[#allocation5 + $0xd8] sm:$0xf0]  ;;  %1633 = vmatmul.msk.bf16.vlgmr.msra.gmra.mxu1 %vm152_vm0, %v1804_v11  ;;  %v1767_v28 = vld [vmem:[#allocation5 + $0xe8] sm:$0xf]  ;;  %v1843_v29 = vld [vmem:[#allocation5 + $0xf4] sm:$0xf0]  ;;  %517 = vmatpush.bf16.msrb.mxu0 %v2071_v16  ;;  %v2088_v34 = vor.u32 %v1836_v24, %v1745_v25 }
   0xd   :  { %1637 = vmatmul.msk.bf16.vlgmr.msra.gmra.mxu2 %vm152_vm0, %v1804_v11  ;;  %1641 = vmatmul.msk.bf16.vlgmr.msra.gmra.mxu3 %vm152_vm0, %v1804_v11  ;;  %v2084_v31 = vor.u32 %v1843_v29, %v1767_v28  ;;  %v1727_v32 = vld [vmem:[#allocation5 + $0xa0] sm:$0xf]  ;;  %v1834_v33 = vld [vmem:[#allocation5 + $0xac] sm:$0xf0]  ;;  %v2090_v35 = vor.u32 %v1837_v26, %v1753_v27  ;;  %v1832_v36 = vld [vmem:[#allocation5 + $0xa4] sm:$0xf] }
   0xe   :  { %530 = vmatpush.bf16.msrb.mxu1 %v2073_v20  ;;  %556 = vmatpush.bf16.msrb.mxu3 %v2075_v21  ;;  %v1729_v37 = vld [vmem:[#allocation5 + $0xb0] sm:$0xf0]  ;;  %v1833_v38 = vld [vmem:[#allocation5 + $0xac] sm:$0xf]  ;;  %v1737_v39 = vld [vmem:[#allocation5 + $0xb8] sm:$0xf0]  ;;  %v2096_v43 = vor.u32 %v1834_v33, %v1727_v32 }
   0xf   :  { %543 = vmatpush.bf16.msrb.mxu2 %v2084_v31  ;;  %v1751_v40 = vld [vmem:[#allocation5 + $0xc8] sm:$0xf]  ;;  %v1839_v41 = vld [vmem:[#allocation5 + $0xd4] sm:$0xf0]  ;;  %v1711_v44 = vld [vmem:[#allocation5 + $0x80] sm:$0xf]  ;;  %v2100_v46 = vor.u32 %v1832_v36, %v1729_v37  ;;  %v2102_v47 = vor.u32 %v1833_v38, %v1737_v39 }
  0x10   :  { %v2093_v42 = vor.u32 %v1839_v41, %v1751_v40  ;;  %518 = vmatpush.bf16.msrb.mxu0 %v2082_v30  ;;  %v1735_v45 = vld [vmem:[#allocation5 + $0xa8] sm:$0xf]  ;;  %v1830_v48 = vld [vmem:[#allocation5 + $0x8c] sm:$0xf0]  ;;  %v1828_v49 = vld [vmem:[#allocation5 + $0x84] sm:$0xf] }
  0x11   :  { %v1835_v50 = vld [vmem:[#allocation5 + $0xb4] sm:$0xf0]  ;;  %v1713_v51 = vld [vmem:[#allocation5 + $0x90] sm:$0xf0]  ;;  %v1829_v52 = vld [vmem:[#allocation5 + $0x8c] sm:$0xf]  ;;  %v2111_v57 = vor.u32 %v1830_v48, %v1711_v44 }
  0x12   :  { %531 = vmatpush.bf16.msrb.mxu1 %v2088_v34  ;;  %557 = vmatpush.bf16.msrb.mxu3 %v2090_v35  ;;  %v1721_v53 = vld [vmem:[#allocation5 + $0x98] sm:$0xf0]  ;;  %v2105_v54 = vor.u32 %v1835_v50, %v1735_v45  ;;  %v1719_v55 = vld [vmem:[#allocation5 + $0x88] sm:$0xf]  ;;  %v1695_v58 = vld [vmem:[#allocation5 + $0x60] sm:$0xf]  ;;  %v2115_v60 = vor.u32 %v1828_v49, %v1713_v51 }
  0x13   :  { %544 = vmatpush.bf16.msrb.mxu2 %v2093_v42  ;;  %v1805_v56 = vld [vmem:[%s2585_s0 + $0x8] sm:$0xff]  ;;  %v1831_v59 = vld [vmem:[#allocation5 + $0x94] sm:$0xf0]  ;;  %v2117_v61 = vor.u32 %v1829_v52, %v1721_v53  ;;  %v1826_v62 = vld [vmem:[#allocation5 + $0x6c] sm:$0xf0] }
  0x14   :  { %519 = vmatpush.bf16.msrb.mxu0 %v2096_v43  ;;  %v1824_v63 = vld [vmem:[#allocation5 + $0x64] sm:$0xf]  ;;  %v1697_v0 = vld [vmem:[#allocation5 + $0x70] sm:$0xf0]  ;;  %v1825_v1 = vld [vmem:[#allocation5 + $0x6c] sm:$0xf]  ;;  %v2120_v3 = vor.u32 %v1831_v59, %v1719_v55  ;;  %v2123_v6 = vor.u32 %v1826_v62, %v1695_v58 }
  0x15   :  { %v1705_v2 = vld [vmem:[#allocation5 + $0x78] sm:$0xf0]  ;;  %v1703_v4 = vld [vmem:[#allocation5 + $0x68] sm:$0xf]  ;;  %v1827_v5 = vld [vmem:[#allocation5 + $0x74] sm:$0xf0]  ;;  %v2127_v7 = vor.u32 %v1824_v63, %v1697_v0 }
  0x16   :  { %532 = vmatpush.bf16.msrb.mxu1 %v2100_v46  ;;  %558 = vmatpush.bf16.msrb.mxu3 %v2102_v47  ;;  %v2129_v8 = vor.u32 %v1825_v1, %v1705_v2  ;;  %v1679_v9 = vld [vmem:[#allocation5 + $0x40] sm:$0xf]  ;;  %v1822_v10 = vld [vmem:[#allocation5 + $0x4c] sm:$0xf0]  ;;  %v1820_v11 = vld [vmem:[#allocation5 + $0x44] sm:$0xf]  ;;  %v2133_v15 = vor.u32 %v1827_v5, %v1703_v4 }
  0x17   :  { %545 = vmatpush.bf16.msrb.mxu2 %v2105_v54  ;;  %v1681_v12 = vld [vmem:[#allocation5 + $0x50] sm:$0xf0]  ;;  %v1821_v13 = vld [vmem:[#allocation5 + $0x4c] sm:$0xf]  ;;  %v1689_v14 = vld [vmem:[#allocation5 + $0x58] sm:$0xf0]  ;;  %v2139_v17 = vor.u32 %v1822_v10, %v1679_v9 }
  0x18   :  { %520 = vmatpush.bf16.msrb.mxu0 %v2111_v57  ;;  %v1663_v18 = vld [vmem:[#allocation5 + $0x20] sm:$0xf]  ;;  %v1818_v19 = vld [vmem:[#allocation5 + $0x2c] sm:$0xf0]  ;;  %v2143_v22 = vor.u32 %v1820_v11, %v1681_v12  ;;  %v2145_v23 = vor.u32 %v1821_v13, %v1689_v14  ;;  %v1816_v24 = vld [vmem:[#allocation5 + $0x24] sm:$0xf] }
  0x19   :  { %v1687_v25 = vld [vmem:[#allocation5 + $0x48] sm:$0xf]  ;;  %v1823_v26 = vld [vmem:[#allocation5 + $0x54] sm:$0xf0]  ;;  %v1665_v27 = vld [vmem:[#allocation5 + $0x30] sm:$0xf0]  ;;  %v2151_v33 = vor.u32 %v1818_v19, %v1663_v18 }
  0x1a   :  { %533 = vmatpush.bf16.msrb.mxu1 %v2115_v60  ;;  %559 = vmatpush.bf16.msrb.mxu3 %v2117_v61  ;;  %v2148_v28 = vor.u32 %v1823_v26, %v1687_v25  ;;  %v1817_v29 = vld [vmem:[#allocation5 + $0x2c] sm:$0xf]  ;;  %v1673_v32 = vld [vmem:[#allocation5 + $0x38] sm:$0xf0]  ;;  %v1671_v36 = vld [vmem:[#allocation5 + $0x28] sm:$0xf]  ;;  %v2155_v38 = vor.u32 %v1816_v24, %v1665_v27 }
  0x1b   :  { %1630 = vmatmul.msk.bf16.gmra.mxu0 %vm152_vm0, %v1805_v56  ;;  %546 = vmatpush.bf16.msrb.mxu2 %v2120_v3  ;;  %v1819_v37 = vld [vmem:[#allocation5 + $0x34] sm:$0xf0]  ;;  %v2157_v39 = vor.u32 %v1817_v29, %v1673_v32  ;;  %v1647_v40 = vld [vmem:[#allocation5] sm:$0xf]  ;;  %v1814_v41 = vld [vmem:[#allocation5 + $0xc] sm:$0xf0] }
  0x1c   :  { %1634 = vmatmul.msk.bf16.gmra.mxu1 %vm152_vm0, %v1805_v56  ;;  %521 = vmatpush.bf16.msrb.mxu0 %v2123_v6  ;;  %v1812_v44 = vld [vmem:[#allocation5 + $0x4] sm:$0xf]  ;;  %v1649_v45 = vld [vmem:[#allocation5 + $0x10] sm:$0xf0]  ;;  %v2160_v48 = vor.u32 %v1819_v37, %v1671_v36  ;;  %v1813_v49 = vld [vmem:[#allocation5 + $0xc] sm:$0xf]  ;;  %v2163_v53 = vor.u32 %v1814_v41, %v1647_v40 }
  0x1d   :  { %1638 = vmatmul.msk.bf16.gmra.mxu2 %vm152_vm0, %v1805_v56  ;;  %1642 = vmatmul.msk.bf16.gmra.mxu3 %vm152_vm0, %v1805_v56  ;;  %v1657_v50 = vld [vmem:[#allocation5 + $0x18] sm:$0xf0]  ;;  %v1655_v51 = vld [vmem:[#allocation5 + $0x8] sm:$0xf]  ;;  %v1815_v52 = vld [vmem:[#allocation5 + $0x14] sm:$0xf0]  ;;  %v2167_v55 = vor.u32 %v1812_v44, %v1649_v45 }
  0x1e   :  { %534 = vmatpush.bf16.msrb.mxu1 %v2127_v7  ;;  %560 = vmatpush.bf16.msrb.mxu3 %v2129_v8  ;;  %v2169_v56 = vor.u32 %v1813_v49, %v1657_v50  ;;  %v1806_v58 = vld [vmem:[%s2585_s0 + $0x10] sm:$0xff]  ;;  %v2175_v59 = vor.u32 %v1815_v52, %v1655_v51  ;;  %v1807_v62 = vld [vmem:[%s2585_s0 + $0x18] sm:$0xff]  ;;  %v1847_v63 = vld [vmem:[%s2589_s4] ss:$0 sm:$0xff] }
  0x1f   :  { %547 = vmatpush.bf16.msrb.mxu2 %v2133_v15  ;;  %v356_v0 = vpack.c.bf16 %v1847_v63, %v1847_v63  ;;  %v102_v4 = vld [vmem:[%s2587_s2] sm:$0xf] }
  0x20   :  { %522 = vmatpush.bf16.msrb.mxu0 %v2139_v17  ;;  %v2266_v5 = vperm.slane %v102_v4, 0  ;;  %v2270_v10 = vperm.slane %v102_v4, 1  ;;  %v2278_v24 = vperm.slane %v102_v4, 2  ;;  %v2280_v25 = vperm.slane %v102_v4, 3 }
  0x22   :  { %535 = vmatpush.bf16.msrb.mxu1 %v2143_v22  ;;  %561 = vmatpush.bf16.msrb.mxu3 %v2145_v23 }
  0x23   :  { %548 = vmatpush.bf16.msrb.mxu2 %v2148_v28 }
  0x24   :  { %523 = vmatpush.bf16.msrb.mxu0 %v2151_v33 }
  0x26   :  { %536 = vmatpush.bf16.msrb.mxu1 %v2155_v38  ;;  %562 = vmatpush.bf16.msrb.mxu3 %v2157_v39 }
  0x27   :  { %549 = vmatpush.bf16.msrb.mxu2 %v2160_v48 }
  0x28   :  { %524 = vmatpush.bf16.msrb.mxu0 %v2163_v53 }
  0x2a   :  { %537 = vmatpush.bf16.msrb.mxu1 %v2167_v55  ;;  %563 = vmatpush.bf16.msrb.mxu3 %v2169_v56 }
  0x2b   :  { %1631 = vmatmul.msk.bf16.gmra.mxu0 %vm152_vm0, %v1806_v58  ;;  %550 = vmatpush.bf16.msrb.mxu2 %v2175_v59 }
  0x2c   :  { %1635 = vmatmul.msk.bf16.gmra.mxu1 %vm152_vm0, %v1806_v58  ;;  %647 = vmatpush.bf16.msra.mxu0 %v2071_v16 }
  0x2d   :  { %1639 = vmatmul.msk.bf16.gmra.mxu2 %vm152_vm0, %v1806_v58  ;;  %1643 = vmatmul.msk.bf16.gmra.mxu3 %vm152_vm0, %v1806_v58 }
  0x2e   :  { %660 = vmatpush.bf16.msra.mxu1 %v2073_v20  ;;  %686 = vmatpush.bf16.msra.mxu3 %v2075_v21 }
  0x2f   :  { %673 = vmatpush.bf16.msra.mxu2 %v2084_v31 }
  0x30   :  { %648 = vmatpush.bf16.msra.mxu0 %v2082_v30 }
  0x32   :  { %661 = vmatpush.bf16.msra.mxu1 %v2088_v34  ;;  %687 = vmatpush.bf16.msra.mxu3 %v2090_v35 }
  0x33   :  { %674 = vmatpush.bf16.msra.mxu2 %v2093_v42 }
  0x34   :  { %649 = vmatpush.bf16.msra.mxu0 %v2096_v43 }
  0x36   :  { %662 = vmatpush.bf16.msra.mxu1 %v2100_v46  ;;  %688 = vmatpush.bf16.msra.mxu3 %v2102_v47 }
  0x37   :  { %675 = vmatpush.bf16.msra.mxu2 %v2105_v54 }
  0x38   :  { %650 = vmatpush.bf16.msra.mxu0 %v2111_v57 }
  0x3a   :  { %663 = vmatpush.bf16.msra.mxu1 %v2115_v60  ;;  %689 = vmatpush.bf16.msra.mxu3 %v2117_v61 }
  0x3b   :  { %676 = vmatpush.bf16.msra.mxu2 %v2120_v3  ;;  %1632 = vmatmul.msk.bf16.gmra.mxu0 %vm152_vm0, %v1807_v62 }
  0x3c   :  { %1636 = vmatmul.msk.bf16.gmra.mxu1 %vm152_vm0, %v1807_v62  ;;  %651 = vmatpush.bf16.msra.mxu0 %v2123_v6 }
  0x3d   :  { %1640 = vmatmul.msk.bf16.gmra.mxu2 %vm152_vm0, %v1807_v62  ;;  %1644 = vmatmul.msk.bf16.gmra.mxu3 %vm152_vm0, %v1807_v62 }
  0x3e   :  { %664 = vmatpush.bf16.msra.mxu1 %v2127_v7  ;;  %690 = vmatpush.bf16.msra.mxu3 %v2129_v8 }
  0x3f   :  { %677 = vmatpush.bf16.msra.mxu2 %v2133_v15 }
  0x40   :  { %652 = vmatpush.bf16.msra.mxu0 %v2139_v17 }
  0x42   :  { %665 = vmatpush.bf16.msra.mxu1 %v2143_v22  ;;  %691 = vmatpush.bf16.msra.mxu3 %v2145_v23 }
  0x43   :  { %678 = vmatpush.bf16.msra.mxu2 %v2148_v28 }
  0x44   :  { %653 = vmatpush.bf16.msra.mxu0 %v2151_v33 }
  0x46   :  { %666 = vmatpush.bf16.msra.mxu1 %v2155_v38  ;;  %692 = vmatpush.bf16.msra.mxu3 %v2157_v39 }
  0x47   :  { %679 = vmatpush.bf16.msra.mxu2 %v2160_v48 }
  0x48   :  { %654 = vmatpush.bf16.msra.mxu0 %v2163_v53 }
  0x4a   :  { %667 = vmatpush.bf16.msra.mxu1 %v2167_v55  ;;  %693 = vmatpush.bf16.msra.mxu3 %v2169_v56 }
  0x4b   :  { %680 = vmatpush.bf16.msra.mxu2 %v2175_v59  ;;  %525 = vmatmul.bf16.vlgmr.msrb.gmra.mxu0 %v356_v0 }
  0x4c   :  { %538 = vmatmul.bf16.vlgmr.msrb.gmra.mxu1 %v356_v0  ;;  %778 = vmatpush.bf16.msrb.mxu0 %v2071_v16 }
  0x4d   :  { %551 = vmatmul.bf16.vlgmr.msrb.gmra.mxu2 %v356_v0  ;;  %564 = vmatmul.bf16.vlgmr.msrb.gmra.mxu3 %v356_v0 }
  0x4e   :  { %791 = vmatpush.bf16.msrb.mxu1 %v2073_v20  ;;  %817 = vmatpush.bf16.msrb.mxu3 %v2075_v21 }
  0x4f   :  { %804 = vmatpush.bf16.msrb.mxu2 %v2084_v31 }
  0x50   :  { %779 = vmatpush.bf16.msrb.mxu0 %v2082_v30 }
  0x52   :  { %792 = vmatpush.bf16.msrb.mxu1 %v2088_v34  ;;  %818 = vmatpush.bf16.msrb.mxu3 %v2090_v35 }
  0x53   :  { %805 = vmatpush.bf16.msrb.mxu2 %v2093_v42 }
  0x54   :  { %780 = vmatpush.bf16.msrb.mxu0 %v2096_v43 }
  0x56   :  { %793 = vmatpush.bf16.msrb.mxu1 %v2100_v46  ;;  %819 = vmatpush.bf16.msrb.mxu3 %v2102_v47 }
  0x57   :  { %806 = vmatpush.bf16.msrb.mxu2 %v2105_v54 }
  0x58   :  { %781 = vmatpush.bf16.msrb.mxu0 %v2111_v57 }
  0x5a   :  { %794 = vmatpush.bf16.msrb.mxu1 %v2115_v60  ;;  %820 = vmatpush.bf16.msrb.mxu3 %v2117_v61 }
  0x5b   :  { %807 = vmatpush.bf16.msrb.mxu2 %v2120_v3 }
  0x5c   :  { %782 = vmatpush.bf16.msrb.mxu0 %v2123_v6 }
  0x5e   :  { %795 = vmatpush.bf16.msrb.mxu1 %v2127_v7  ;;  %821 = vmatpush.bf16.msrb.mxu3 %v2129_v8 }
  0x5f   :  { %808 = vmatpush.bf16.msrb.mxu2 %v2133_v15 }
  0x60   :  { %783 = vmatpush.bf16.msrb.mxu0 %v2139_v17 }
  0x62   :  { %796 = vmatpush.bf16.msrb.mxu1 %v2143_v22  ;;  %822 = vmatpush.bf16.msrb.mxu3 %v2145_v23 }
  0x63   :  { %809 = vmatpush.bf16.msrb.mxu2 %v2148_v28 }
  0x64   :  { %784 = vmatpush.bf16.msrb.mxu0 %v2151_v33 }
  0x66   :  { %797 = vmatpush.bf16.msrb.mxu1 %v2155_v38  ;;  %823 = vmatpush.bf16.msrb.mxu3 %v2157_v39 }
  0x67   :  { %810 = vmatpush.bf16.msrb.mxu2 %v2160_v48 }
  0x68   :  { %785 = vmatpush.bf16.msrb.mxu0 %v2163_v53 }
  0x6a   :  { %798 = vmatpush.bf16.msrb.mxu1 %v2167_v55  ;;  %824 = vmatpush.bf16.msrb.mxu3 %v2169_v56 }
  0x6b   :  { %811 = vmatpush.bf16.msrb.mxu2 %v2175_v59 }
  0x88   :  { %v2259_v1 = vpop.f32.mrf.mxu0 }
  0x89   :  { %v2261_v2 = vpop.f32.mrf.mxu1 }
  0x90   :  { %v2268_v9 = vpop.f32.mrf.mxu2  ;;  %v2272_v11 = vpop.f32.mrf.mxu3 }
  0x91   :  { %v176_v12 = vpop.f32.mrf.mxu0  ;;  %v205_v14 = vpop.f32.mrf.mxu1 }
  0x92   :  { %v177_v13 = vadd.f32 %v176_v12, %v2266_v5  ;;  %v206_v18 = vadd.f32 %v205_v14, %v2270_v10 }
  0x94   :  { %v2276_v19 = vpack.c.bf16 %v206_v18, %v177_v13 }
  0x98   :  { %v234_v26 = vpop.f32.mrf.mxu2  ;;  %v263_v29 = vpop.f32.mrf.mxu3 }
  0x99   :  { %v235_v27 = vadd.f32 %v234_v26, %v2278_v24  ;;  %v179_v32 = vpop.f32.mrf.mxu0  ;;  %v264_v36 = vadd.f32 %v263_v29, %v2280_v25  ;;  %v208_v40 = vpop.f32.mrf.mxu1 }
  0x9a   :  { %v180_v37 = vadd.f32 %v179_v32, %v2266_v5  ;;  %v209_v41 = vadd.f32 %v208_v40, %v2270_v10 }
  0x9b   :  { %v2286_v44 = vpack.c.bf16 %v264_v36, %v235_v27 }
  0x9c   :  { %v2288_v45 = vpack.c.bf16 %v209_v41, %v180_v37 }
  0xa0   :  { %v237_v49 = vpop.f32.mrf.mxu2  ;;  %v266_v51 = vpop.f32.mrf.mxu3 }
  0xa1   :  { %v238_v50 = vadd.f32 %v237_v49, %v2278_v24  ;;  %v181_v52 = vpop.f32.mrf.mxu0  ;;  %v267_v58 = vadd.f32 %v266_v51, %v2280_v25  ;;  %v210_v63 = vpop.f32.mrf.mxu1 }
  0xa2   :  { %v182_v62 = vadd.f32 %v181_v52, %v2266_v5  ;;  %v211_v0 = vadd.f32 %v210_v63, %v2270_v10 }
  0xa3   :  { %v2294_v4 = vpack.c.bf16 %v267_v58, %v238_v50 }
  0xa4   :  { %v2296_v12 = vpack.c.bf16 %v211_v0, %v182_v62 }
  0xa8   :  { %v239_v13 = vpop.f32.mrf.mxu2  ;;  %v268_v18 = vpop.f32.mrf.mxu3 }
  0xa9   :  { %v240_v14 = vadd.f32 %v239_v13, %v2278_v24  ;;  %v184_v26 = vpop.f32.mrf.mxu0  ;;  %v269_v27 = vadd.f32 %v268_v18, %v2280_v25  ;;  %v213_v32 = vpop.f32.mrf.mxu1 }
  0xaa   :  { %v185_v29 = vadd.f32 %v184_v26, %v2266_v5  ;;  %v214_v36 = vadd.f32 %v213_v32, %v2270_v10 }
  0xab   :  { %v2302_v37 = vpack.c.bf16 %v269_v27, %v240_v14 }
  0xac   :  { %v2304_v40 = vpack.c.bf16 %v214_v36, %v185_v29 }
  0xae   :  { %2600 = vst [vmem:[#allocation8_spill] sm:$0xff] %v2304_v40 }
  0xb0   :  { %v242_v41 = vpop.f32.mrf.mxu2  ;;  %v271_v50 = vpop.f32.mrf.mxu3 }
  0xb1   :  { %v243_v49 = vadd.f32 %v242_v41, %v2278_v24  ;;  %v186_v51 = vpop.f32.mrf.mxu0  ;;  %v272_v52 = vadd.f32 %v271_v50, %v2280_v25  ;;  %v215_v62 = vpop.f32.mrf.mxu1 }
  0xb2   :  { %v187_v58 = vadd.f32 %v186_v51, %v2266_v5  ;;  %v216_v63 = vadd.f32 %v215_v62, %v2270_v10 }
  0xb3   :  { %v2310_v0 = vpack.c.bf16 %v272_v52, %v243_v49  ;;  %v175_v49 = vadd.f32 %v2259_v1, %v2266_v5  ;;  %v204_v52 = vadd.f32 %v2261_v2, %v2270_v10  ;;  %v233_v1 = vadd.f32 %v2268_v9, %v2278_v24 }
  0xb4   :  { %v2312_v13 = vpack.c.bf16 %v216_v63, %v187_v58  ;;  %v262_v2 = vadd.f32 %v2272_v11, %v2280_v25 }
  0xb5   :  { %2601 = vst [vmem:[#allocation9_spill] sm:$0xff] %v2310_v0 }
  0xb6   :  { %2602 = vst [vmem:[#allocation10_spill] sm:$0xff] %v2312_v13 }
  0xb8   :  { %v244_v14 = vpop.f32.mrf.mxu2  ;;  %v273_v26 = vpop.f32.mrf.mxu3 }
  0xb9   :  { %v245_v18 = vadd.f32 %v244_v14, %v2278_v24  ;;  %v189_v27 = vpop.f32.mrf.mxu0  ;;  %v274_v29 = vadd.f32 %v273_v26, %v2280_v25  ;;  %v218_v36 = vpop.f32.mrf.mxu1 }
  0xba   :  { %v190_v32 = vadd.f32 %v189_v27, %v2266_v5  ;;  %v219_v41 = vadd.f32 %v218_v36, %v2270_v10 }
  0xbb   :  { %v2318_v50 = vpack.c.bf16 %v274_v29, %v245_v18  ;;  %v281_v29 = vpack.c.bf16 %v204_v52, %v175_v49 }
  0xbc   :  { %v2320_v51 = vpack.c.bf16 %v219_v41, %v190_v32 }
  0xbd   :  { %2603 = vst [vmem:[#allocation11_spill] sm:$0xff] %v2318_v50 }
  0xbe   :  { %2604 = vst [vmem:[#allocation12_spill] sm:$0xff] %v2320_v51  ;;  %v352_v51 = vunpack.c.l.bf16 %v281_v29 }
  0xc0   :  { %v247_v58 = vpop.f32.mrf.mxu2  ;;  %v276_v63 = vpop.f32.mrf.mxu3 }
  0xc1   :  { %v248_v62 = vadd.f32 %v247_v58, %v2278_v24  ;;  %v191_v14 = vpop.f32.mrf.mxu0  ;;  %v277_v26 = vadd.f32 %v276_v63, %v2280_v25  ;;  %v220_v36 = vpop.f32.mrf.mxu1 }
  0xc2   :  { %v192_v27 = vadd.f32 %v191_v14, %v2266_v5  ;;  %v221_v18 = vadd.f32 %v220_v36, %v2270_v10  ;;  %v353_v14 = vunpack.c.h.bf16 %v281_v29 }
  0xc3   :  { %v2330_v32 = vpack.c.bf16 %v277_v26, %v248_v62  ;;  %v282_v26 = vpack.c.bf16 %v262_v2, %v233_v1 }
  0xc4   :  { %v2332_v41 = vpack.c.bf16 %v221_v18, %v192_v27 }
  0xc5   :  { %2605 = vst [vmem:[#allocation13_spill] sm:$0xff] %v2330_v32  ;;  %v355_v18 = vunpack.c.h.bf16 %v282_v26  ;;  %v354_v2 = vunpack.c.l.bf16 %v282_v26 }
  0xc6   :  { %2606 = vst [vmem:[#allocation14_spill] sm:$0xff] %v2332_v41 }
  0xc8   :  { %v249_v58 = vpop.f32.mrf.mxu2  ;;  %v278_v50 = vpop.f32.mrf.mxu3 }
  0xc9   :  { %v250_v63 = vadd.f32 %v249_v58, %v2278_v24  ;;  %v526_v5 = vpop.f32.mrf.mxu0  ;;  %v279_v10 = vadd.f32 %v278_v50, %v2280_v25  ;;  %v539_v52 = vpop.f32.mrf.mxu1 }
  0xca   :  { %v569_v49 = vadd.f32 %v526_v5, %v352_v51  ;;  %v570_v62 = vadd.f32 %v539_v52, %v353_v14 }
  0xcb   :  { %v2340_v27 = vpack.c.bf16 %v279_v10, %v250_v63 }
  0xcc   :  { %v1773_v36 = vmul.f32 -1.442695, %v569_v49  ;;  %v1774_v9 = vmul.f32 -1.442695, %v570_v62 }
  0xcd   :  { %2607 = vst [vmem:[#allocation15_spill] sm:$0xff] %v2340_v27 }
  0xce   :  { %1849 = vpow2.f32 %v1773_v36 }
  0xcf   :  { %1851 = vpow2.f32 %v1774_v9 }
  0xd0   :  { %v552_v11 = vpop.f32.mrf.mxu2  ;;  %v565_v41 = vpop.f32.mrf.mxu3 }
  0xd1   :  { %v528_v32 = vpop.f32.mrf.mxu0  ;;  %v572_v24 = vadd.f32 %v565_v41, %v355_v18  ;;  %v541_v58 = vpop.f32.mrf.mxu1  ;;  %v571_v14 = vadd.f32 %v552_v11, %v354_v2  ;;  %v1848_v11 = vld [vmem:[%s2590_s5] ss:$0 sm:$0xff] }
  0xd3   :  { %v1775_v29 = vmul.f32 -1.442695, %v572_v24 }
  0xd4   :  { %v1850_v13 = vpop.eup %1849 }
  0xd5   :  { %v1852_v0 = vpop.eup %1851  ;;  %v576_v25 = vadd.f32 1.0, %v1850_v13  ;;  %1853 = vpow2.f32 %v1775_v29 }
  0xd6   :  { %v595_v50 = vadd.f32 1.0, %v1852_v0 }
  0xd7   :  { %1855 = vrcp.f32 %v576_v25  ;;  %v588_v36 = vand.u32 2147483648, %v576_v25  ;;  %v586_v9 = vand.u32 2147483647, %v576_v25  ;;  %vm582_vm3 = vweird.f32 %v576_v25 }
  0xd8   :  { %1857 = vrcp.f32 %v595_v50  ;;  %v554_v51 = vpop.f32.mrf.mxu2  ;;  %v567_v1 = vpop.f32.mrf.mxu3  ;;  %v607_v13 = vand.u32 2147483648, %v595_v50  ;;  %v605_v24 = vand.u32 2147483647, %v595_v50  ;;  %vm601_vm4 = vweird.f32 %v595_v50 }
  0xd9   :  { %v589_v29 = vor.u32 1.1754944e-38, %v588_v36  ;;  %vm587_vm7 = vcmp.eq.f32.partialorder %v586_v9, 8.507059e+37 }
  0xda   :  { %v608_v1 = vor.u32 1.1754944e-38, %v607_v13  ;;  %vm606_vm8 = vcmp.eq.f32.partialorder %v605_v24, 8.507059e+37 }
  0xdb   :  { %v1854_v63 = vpop.eup %1853 }
  0xdc   :  { %v615_v10 = vadd.f32 1.0, %v1854_v63 }
  0xdd   :  { %v1856_v5 = vpop.eup %1855 }
  0xde   :  { %v1858_v49 = vpop.eup %1857  ;;  %v578_v52 = vmul.f32 %v1856_v5, %v576_v25  ;;  %1859 = vrcp.f32 %v615_v10  ;;  %vm583_vm1 = vweird.f32 %v1856_v5  ;;  %v627_v36 = vand.u32 2147483648, %v615_v10 }
  0xdf   :  { %v597_v32 = vmul.f32 %v1858_v49, %v595_v50  ;;  %1861 = vtanh.f32 %v571_v14  ;;  %vm602_vm2 = vweird.f32 %v1858_v49  ;;  %vm584_vm5 = vmor %vm582_vm3, %vm583_vm1  ;;  %vm621_vm10 = vweird.f32 %v615_v10 }
  0xe0   :  { %v579_v41 = vsub.f32 1.0, %v578_v52  ;;  %vm603_vm6 = vmor %vm601_vm4, %vm602_vm2  ;;  %v628_v9 = vor.u32 1.1754944e-38, %v627_v36 }
  0xe1   :  { %v598_v62 = vsub.f32 1.0, %v597_v32 }
  0xe2   :  { %v580_v0 = vmul.f32 %v1856_v5, %v579_v41 }
  0xe3   :  { %v599_v18 = vmul.f32 %v1858_v49, %v598_v62 }
  0xe4   :  { %v581_v26 = vadd.f32 %v1856_v5, %v580_v0  ;;  %v1860_v58 = vpop.eup %1859 }
  0xe5   :  { %v600_v51 = vadd.f32 %v1858_v49, %v599_v18  ;;  %v617_v63 = vmul.f32 %v1860_v58, %v615_v10  ;;  %v1862_v14 = vpop.eup %1861  ;;  %vm622_vm9 = vweird.f32 %v1860_v58 }
  0xe6   :  { %v585_v2 = vsel %vm584_vm5, %v1856_v5, %v581_v26  ;;  %v625_v5 = vand.u32 2147483647, %v615_v10  ;;  %vm623_vm11 = vmor %vm621_vm10, %vm622_vm9  ;;  %v644_v10 = vunpack.c.h.bf16 %v2276_v19 }
  0xe7   :  { %v590_v52 = vsel %vm587_vm7, %v589_v29, %v585_v2  ;;  %v604_v32 = vsel %vm603_vm6, %v1858_v49, %v600_v51  ;;  %v618_v62 = vsub.f32 1.0, %v617_v63  ;;  %v646_v63 = vunpack.c.h.bf16 %v2286_v44 }
  0xe8   :  { %v609_v41 = vsel %vm606_vm8, %v608_v1, %v604_v32  ;;  %v632_v25 = vmul.f32 %v1862_v14, %v590_v52  ;;  %vm626_vm12 = vcmp.eq.f32.partialorder %v625_v5, 8.507059e+37 }
  0xe9   :  { %v631_v50 = vmul.f32 %v1848_v11, %v609_v41  ;;  %v619_v0 = vmul.f32 %v1860_v58, %v618_v62 }
  0xeb   :  { %v2345_v27 = vadd.f32 %v632_v25, %v631_v50  ;;  %v620_v40 = vadd.f32 %v1860_v58, %v619_v0 }
  0xed   :  { %1863 = vtanh.f32 %v2345_v27  ;;  %v624_v13 = vsel %vm623_vm11, %v1860_v58, %v620_v40  ;;  %v643_v40 = vunpack.c.l.bf16 %v2276_v19 }
  0xee   :  { %v629_v18 = vsel %vm626_vm12, %v628_v9, %v624_v13 }
  0xf3   :  { %v1864_v49 = vpop.eup %1863 }
  0xf4   :  { %v635_v24 = vmul.f32 %v1864_v49, %v629_v18  ;;  %v645_v49 = vunpack.c.l.bf16 %v2286_v44 }
  0xf6   :  { %v636_v26 = vpack.c.bf16 %v635_v24, %v635_v24 }
  0xf8   :  { %637 = vst [vmem:[%s2591_s6] sm:$0xf] %v636_v26  ;;  %655 = vmatmul.bf16.vlgmr.msra.gmra.mxu0 %v636_v26  ;;  %668 = vmatmul.bf16.vlgmr.msra.gmra.mxu1 %v636_v26 }
  0xf9   :  { %681 = vmatmul.bf16.vlgmr.msra.gmra.mxu2 %v636_v26  ;;  %694 = vmatmul.bf16.vlgmr.msra.gmra.mxu3 %v636_v26 }
  0xfa   :  { %909 = vmatpush.bf16.msra.mxu0 %v2071_v16  ;;  %922 = vmatpush.bf16.msra.mxu1 %v2073_v20 }
  0xfb   :  { %935 = vmatpush.bf16.msra.mxu2 %v2084_v31  ;;  %948 = vmatpush.bf16.msra.mxu3 %v2075_v21 }
  0xfe   :  { %910 = vmatpush.bf16.msra.mxu0 %v2082_v30  ;;  %923 = vmatpush.bf16.msra.mxu1 %v2088_v34 }
  0xff   :  { %936 = vmatpush.bf16.msra.mxu2 %v2093_v42  ;;  %949 = vmatpush.bf16.msra.mxu3 %v2090_v35 }
 0x102   :  { %911 = vmatpush.bf16.msra.mxu0 %v2096_v43  ;;  %924 = vmatpush.bf16.msra.mxu1 %v2100_v46 }
 0x103   :  { %937 = vmatpush.bf16.msra.mxu2 %v2105_v54  ;;  %950 = vmatpush.bf16.msra.mxu3 %v2102_v47 }
 0x106   :  { %912 = vmatpush.bf16.msra.mxu0 %v2111_v57  ;;  %925 = vmatpush.bf16.msra.mxu1 %v2115_v60 }
 0x107   :  { %938 = vmatpush.bf16.msra.mxu2 %v2120_v3  ;;  %951 = vmatpush.bf16.msra.mxu3 %v2117_v61 }
 0x10a   :  { %913 = vmatpush.bf16.msra.mxu0 %v2123_v6  ;;  %926 = vmatpush.bf16.msra.mxu1 %v2127_v7 }
 0x10b   :  { %939 = vmatpush.bf16.msra.mxu2 %v2133_v15  ;;  %952 = vmatpush.bf16.msra.mxu3 %v2129_v8 }
 0x10e   :  { %914 = vmatpush.bf16.msra.mxu0 %v2139_v17  ;;  %927 = vmatpush.bf16.msra.mxu1 %v2143_v22 }
 0x10f   :  { %940 = vmatpush.bf16.msra.mxu2 %v2148_v28  ;;  %953 = vmatpush.bf16.msra.mxu3 %v2145_v23 }
 0x112   :  { %915 = vmatpush.bf16.msra.mxu0 %v2151_v33  ;;  %928 = vmatpush.bf16.msra.mxu1 %v2155_v38 }
 0x113   :  { %941 = vmatpush.bf16.msra.mxu2 %v2160_v48  ;;  %954 = vmatpush.bf16.msra.mxu3 %v2157_v39 }
 0x116   :  { %916 = vmatpush.bf16.msra.mxu0 %v2163_v53  ;;  %929 = vmatpush.bf16.msra.mxu1 %v2167_v55 }
 0x117   :  { %942 = vmatpush.bf16.msra.mxu2 %v2175_v59  ;;  %955 = vmatpush.bf16.msra.mxu3 %v2169_v56 }
 0x175   :  { %v656_v58 = vpop.f32.mrf.mxu0  ;;  %v669_v11 = vpop.f32.mrf.mxu1 }
 0x176   :  { %v699_v29 = vadd.f32 %v656_v58, %v643_v40  ;;  %v700_v51 = vadd.f32 %v669_v11, %v644_v10 }
 0x178   :  { %v1776_v1 = vmul.f32 -1.442695, %v699_v29  ;;  %v1777_v2 = vmul.f32 -1.442695, %v700_v51 }
 0x17a   :  { %1865 = vpow2.f32 %v1776_v1 }
 0x17b   :  { %1867 = vpow2.f32 %v1777_v2 }
 0x17c   :  { %v682_v14 = vpop.f32.mrf.mxu2  ;;  %v695_v52 = vpop.f32.mrf.mxu3 }
 0x17d   :  { %v702_v32 = vadd.f32 %v695_v52, %v646_v63  ;;  %v658_v41 = vpop.f32.mrf.mxu0  ;;  %v671_v25 = vpop.f32.mrf.mxu1  ;;  %v701_v26 = vadd.f32 %v682_v14, %v645_v49 }
 0x17f   :  { %v1778_v62 = vmul.f32 -1.442695, %v702_v32 }
 0x180   :  { %v1866_v50 = vpop.eup %1865 }
 0x181   :  { %v1868_v0 = vpop.eup %1867  ;;  %v706_v36 = vadd.f32 1.0, %v1866_v50  ;;  %1869 = vpow2.f32 %v1778_v62 }
 0x182   :  { %v725_v19 = vadd.f32 1.0, %v1868_v0 }
 0x183   :  { %1871 = vrcp.f32 %v706_v36  ;;  %v718_v51 = vand.u32 2147483648, %v706_v36  ;;  %v716_v63 = vand.u32 2147483647, %v706_v36  ;;  %vm712_vm15 = vweird.f32 %v706_v36 }
 0x184   :  { %1873 = vrcp.f32 %v725_v19  ;;  %v684_v5 = vpop.f32.mrf.mxu2  ;;  %v697_v13 = vpop.f32.mrf.mxu3  ;;  %v737_v1 = vand.u32 2147483648, %v725_v19  ;;  %v735_v32 = vand.u32 2147483647, %v725_v19  ;;  %vm731_vm0 = vweird.f32 %v725_v19 }
 0x185   :  { %v719_v14 = vor.u32 1.1754944e-38, %v718_v51  ;;  %vm717_vm3 = vcmp.eq.f32.partialorder %v716_v63, 8.507059e+37 }
 0x186   :  { %v738_v50 = vor.u32 1.1754944e-38, %v737_v1  ;;  %vm736_vm4 = vcmp.eq.f32.partialorder %v735_v32, 8.507059e+37 }
 0x187   :  { %v1870_v9 = vpop.eup %1869 }
 0x188   :  { %v745_v18 = vadd.f32 1.0, %v1870_v9 }
 0x189   :  { %v1872_v24 = vpop.eup %1871 }
 0x18a   :  { %v1874_v40 = vpop.eup %1873  ;;  %v708_v10 = vmul.f32 %v1872_v24, %v706_v36  ;;  %1875 = vrcp.f32 %v745_v18  ;;  %vm713_vm13 = vweird.f32 %v1872_v24  ;;  %vm751_vm6 = vweird.f32 %v745_v18 }
 0x18b   :  { %v727_v58 = vmul.f32 %v1874_v40, %v725_v19  ;;  %1877 = vtanh.f32 %v701_v26  ;;  %vm732_vm14 = vweird.f32 %v1874_v40  ;;  %vm714_vm1 = vmor %vm712_vm15, %vm713_vm13 }
 0x18c   :  { %v709_v11 = vsub.f32 1.0, %v708_v10  ;;  %vm733_vm2 = vmor %vm731_vm0, %vm732_vm14 }
 0x18d   :  { %v728_v29 = vsub.f32 1.0, %v727_v58 }
 0x18e   :  { %v710_v2 = vmul.f32 %v1872_v24, %v709_v11 }
 0x18f   :  { %v729_v52 = vmul.f32 %v1874_v40, %v728_v29  ;;  %v757_v29 = vand.u32 2147483648, %v745_v18 }
 0x190   :  { %v1876_v41 = vpop.eup %1875  ;;  %v711_v44 = vadd.f32 %v1872_v24, %v710_v2 }
 0x191   :  { %v730_v25 = vadd.f32 %v1874_v40, %v729_v52  ;;  %v747_v62 = vmul.f32 %v1876_v41, %v745_v18  ;;  %v1878_v5 = vpop.eup %1877  ;;  %vm752_vm5 = vweird.f32 %v1876_v41  ;;  %v758_v1 = vor.u32 1.1754944e-38, %v757_v29 }
 0x192   :  { %v715_v0 = vsel %vm714_vm1, %v1872_v24, %v711_v44  ;;  %v755_v24 = vand.u32 2147483647, %v745_v18  ;;  %vm753_vm7 = vmor %vm751_vm6, %vm752_vm5  ;;  %v775_v18 = vunpack.c.h.bf16 %v2288_v45 }
 0x193   :  { %v720_v13 = vsel %vm717_vm3, %v719_v14, %v715_v0  ;;  %v734_v9 = vsel %vm733_vm2, %v1874_v40, %v730_v25  ;;  %v748_v49 = vsub.f32 1.0, %v747_v62 }
 0x194   :  { %v739_v26 = vsel %vm736_vm4, %v738_v50, %v734_v9  ;;  %v762_v10 = vmul.f32 %v1878_v5, %v720_v13  ;;  %vm756_vm8 = vcmp.eq.f32.partialorder %v755_v24, 8.507059e+37  ;;  %v777_v50 = vunpack.c.h.bf16 %v2294_v4 }
 0x195   :  { %v761_v58 = vmul.f32 %v739_v26, %v2345_v27  ;;  %v749_v11 = vmul.f32 %v1876_v41, %v748_v49  ;;  %v774_v27 = vunpack.c.l.bf16 %v2288_v45 }
 0x197   :  { %v2388_v36 = vadd.f32 %v762_v10, %v761_v58  ;;  %v750_v19 = vadd.f32 %v1876_v41, %v749_v11 }
 0x199   :  { %1879 = vtanh.f32 %v2388_v36  ;;  %v754_v51 = vsel %vm753_vm7, %v1876_v41, %v750_v19 }
 0x19a   :  { %v759_v2 = vsel %vm756_vm8, %v758_v1, %v754_v51  ;;  %v776_v51 = vunpack.c.l.bf16 %v2294_v4 }
 0x19f   :  { %v1880_v40 = vpop.eup %1879 }
 0x1a0   :  { %v765_v63 = vmul.f32 %v1880_v40, %v759_v2 }
 0x1a2   :  { %v766_v52 = vpack.c.bf16 %v765_v63, %v765_v63 }
 0x1a4   :  { %1779 = vst [vmem:[%s2591_s6 + $0x4] sm:$0xf] %v766_v52  ;;  %786 = vmatmul.bf16.vlgmr.msrb.gmra.mxu0 %v766_v52  ;;  %799 = vmatmul.bf16.vlgmr.msrb.gmra.mxu1 %v766_v52 }
 0x1a5   :  { %812 = vmatmul.bf16.vlgmr.msrb.gmra.mxu2 %v766_v52  ;;  %825 = vmatmul.bf16.vlgmr.msrb.gmra.mxu3 %v766_v52 }
 0x1a6   :  { %1040 = vmatpush.bf16.msrb.mxu0 %v2071_v16  ;;  %1053 = vmatpush.bf16.msrb.mxu1 %v2073_v20 }
 0x1a7   :  { %1066 = vmatpush.bf16.msrb.mxu2 %v2084_v31  ;;  %1079 = vmatpush.bf16.msrb.mxu3 %v2075_v21 }
 0x1aa   :  { %1041 = vmatpush.bf16.msrb.mxu0 %v2082_v30  ;;  %1054 = vmatpush.bf16.msrb.mxu1 %v2088_v34 }
 0x1ab   :  { %1067 = vmatpush.bf16.msrb.mxu2 %v2093_v42  ;;  %1080 = vmatpush.bf16.msrb.mxu3 %v2090_v35 }
 0x1ae   :  { %1042 = vmatpush.bf16.msrb.mxu0 %v2096_v43  ;;  %1055 = vmatpush.bf16.msrb.mxu1 %v2100_v46 }
 0x1af   :  { %1068 = vmatpush.bf16.msrb.mxu2 %v2105_v54  ;;  %1081 = vmatpush.bf16.msrb.mxu3 %v2102_v47 }
 0x1b2   :  { %1043 = vmatpush.bf16.msrb.mxu0 %v2111_v57  ;;  %1056 = vmatpush.bf16.msrb.mxu1 %v2115_v60 }
 0x1b3   :  { %1069 = vmatpush.bf16.msrb.mxu2 %v2120_v3  ;;  %1082 = vmatpush.bf16.msrb.mxu3 %v2117_v61 }
 0x1b6   :  { %1044 = vmatpush.bf16.msrb.mxu0 %v2123_v6  ;;  %1057 = vmatpush.bf16.msrb.mxu1 %v2127_v7 }
 0x1b7   :  { %1070 = vmatpush.bf16.msrb.mxu2 %v2133_v15  ;;  %1083 = vmatpush.bf16.msrb.mxu3 %v2129_v8 }
 0x1ba   :  { %1045 = vmatpush.bf16.msrb.mxu0 %v2139_v17  ;;  %1058 = vmatpush.bf16.msrb.mxu1 %v2143_v22 }
 0x1bb   :  { %1071 = vmatpush.bf16.msrb.mxu2 %v2148_v28  ;;  %1084 = vmatpush.bf16.msrb.mxu3 %v2145_v23 }
 0x1be   :  { %1046 = vmatpush.bf16.msrb.mxu0 %v2151_v33  ;;  %1059 = vmatpush.bf16.msrb.mxu1 %v2155_v38 }
 0x1bf   :  { %1072 = vmatpush.bf16.msrb.mxu2 %v2160_v48  ;;  %1085 = vmatpush.bf16.msrb.mxu3 %v2157_v39 }
 0x1c2   :  { %1047 = vmatpush.bf16.msrb.mxu0 %v2163_v53  ;;  %1060 = vmatpush.bf16.msrb.mxu1 %v2167_v55 }
 0x1c3   :  { %1073 = vmatpush.bf16.msrb.mxu2 %v2175_v59  ;;  %1086 = vmatpush.bf16.msrb.mxu3 %v2169_v56 }
 0x221   :  { %v787_v32 = vpop.f32.mrf.mxu0  ;;  %v800_v41 = vpop.f32.mrf.mxu1 }
 0x222   :  { %v830_v44 = vadd.f32 %v787_v32, %v774_v27  ;;  %v831_v14 = vadd.f32 %v800_v41, %v775_v18 }
 0x224   :  { %v1780_v25 = vmul.f32 -1.442695, %v830_v44  ;;  %v1781_v62 = vmul.f32 -1.442695, %v831_v14 }
 0x226   :  { %1881 = vpow2.f32 %v1780_v25 }
 0x227   :  { %1883 = vpow2.f32 %v1781_v62 }
 0x228   :  { %v813_v0 = vpop.f32.mrf.mxu2  ;;  %v826_v5 = vpop.f32.mrf.mxu3 }
 0x229   :  { %v833_v13 = vadd.f32 %v826_v5, %v777_v50  ;;  %v789_v9 = vpop.f32.mrf.mxu0  ;;  %v802_v49 = vpop.f32.mrf.mxu1  ;;  %v832_v2 = vadd.f32 %v813_v0, %v776_v51 }
 0x22b   :  { %v1782_v26 = vmul.f32 -1.442695, %v833_v13 }
 0x22c   :  { %v1882_v10 = vpop.eup %1881 }
 0x22d   :  { %v1884_v58 = vpop.eup %1883  ;;  %v837_v11 = vadd.f32 1.0, %v1882_v10  ;;  %1885 = vpow2.f32 %v1782_v26 }
 0x22e   :  { %v856_v45 = vadd.f32 1.0, %v1884_v58 }
 0x22f   :  { %1887 = vrcp.f32 %v837_v11  ;;  %v849_v41 = vand.u32 2147483648, %v837_v11  ;;  %v847_v25 = vand.u32 2147483647, %v837_v11  ;;  %vm843_vm11 = vweird.f32 %v837_v11 }
 0x230   :  { %1889 = vrcp.f32 %v856_v45  ;;  %v815_v19 = vpop.f32.mrf.mxu2  ;;  %v828_v29 = vpop.f32.mrf.mxu3  ;;  %v868_v44 = vand.u32 2147483648, %v856_v45  ;;  %v866_v50 = vand.u32 2147483647, %v856_v45  ;;  %vm862_vm12 = vweird.f32 %v856_v45 }
 0x231   :  { %v850_v0 = vor.u32 1.1754944e-38, %v849_v41  ;;  %vm848_vm15 = vcmp.eq.f32.partialorder %v847_v25, 8.507059e+37 }
 0x232   :  { %v869_v49 = vor.u32 1.1754944e-38, %v868_v44  ;;  %vm867_vm0 = vcmp.eq.f32.partialorder %v866_v50, 8.507059e+37 }
 0x233   :  { %v1886_v24 = vpop.eup %1885 }
 0x234   :  { %v876_v1 = vadd.f32 1.0, %v1886_v24 }
 0x235   :  { %v1888_v40 = vpop.eup %1887 }
 0x236   :  { %v1890_v63 = vpop.eup %1889  ;;  %v839_v52 = vmul.f32 %v1888_v40, %v837_v11  ;;  %1891 = vrcp.f32 %v876_v1  ;;  %vm844_vm9 = vweird.f32 %v1888_v40  ;;  %vm882_vm2 = vweird.f32 %v876_v1 }
 0x237   :  { %v858_v27 = vmul.f32 %v1890_v63, %v856_v45  ;;  %1893 = vtanh.f32 %v832_v2  ;;  %vm863_vm10 = vweird.f32 %v1890_v63  ;;  %vm845_vm13 = vmor %vm843_vm11, %vm844_vm9 }
 0x238   :  { %v840_v18 = vsub.f32 1.0, %v839_v52  ;;  %vm864_vm14 = vmor %vm862_vm12, %vm863_vm10 }
 0x239   :  { %v859_v32 = vsub.f32 1.0, %v858_v27  ;;  %v888_v27 = vand.u32 2147483648, %v876_v1 }
 0x23a   :  { %v841_v14 = vmul.f32 %v1888_v40, %v840_v18 }
 0x23b   :  { %v860_v62 = vmul.f32 %v1890_v63, %v859_v32  ;;  %v889_v32 = vor.u32 1.1754944e-38, %v888_v27  ;;  %v907_v27 = vunpack.c.l.bf16 %v2302_v37 }
 0x23c   :  { %v1892_v5 = vpop.eup %1891  ;;  %v842_v4 = vadd.f32 %v1888_v40, %v841_v14 }
 0x23d   :  { %v861_v13 = vadd.f32 %v1890_v63, %v860_v62  ;;  %v878_v9 = vmul.f32 %v1892_v5, %v876_v1  ;;  %v1894_v10 = vpop.eup %1893  ;;  %vm883_vm1 = vweird.f32 %v1892_v5 }
 0x23e   :  { %v846_v26 = vsel %vm845_vm13, %v1888_v40, %v842_v4  ;;  %v886_v40 = vand.u32 2147483647, %v876_v1  ;;  %vm884_vm3 = vmor %vm882_vm2, %vm883_vm1  ;;  %v906_v1 = vunpack.c.h.bf16 %v2296_v12 }
 0x23f   :  { %v851_v58 = vsel %vm848_vm15, %v850_v0, %v846_v26  ;;  %v865_v19 = vsel %vm864_vm14, %v1890_v63, %v861_v13  ;;  %v879_v29 = vsub.f32 1.0, %v878_v9  ;;  %v908_v13 = vunpack.c.h.bf16 %v2302_v37 }
 0x240   :  { %v870_v24 = vsel %vm867_vm0, %v869_v49, %v865_v19  ;;  %v893_v51 = vmul.f32 %v1894_v10, %v851_v58  ;;  %vm887_vm4 = vcmp.eq.f32.partialorder %v886_v40, 8.507059e+37 }
 0x241   :  { %v892_v2 = vmul.f32 %v870_v24, %v2388_v36  ;;  %v880_v52 = vmul.f32 %v1892_v5, %v879_v29  ;;  %v905_v36 = vunpack.c.l.bf16 %v2296_v12 }
 0x243   :  { %v2431_v11 = vadd.f32 %v893_v51, %v892_v2  ;;  %v881_v45 = vadd.f32 %v1892_v5, %v880_v52 }
 0x245   :  { %1895 = vtanh.f32 %v2431_v11  ;;  %v885_v18 = vsel %vm884_vm3, %v1892_v5, %v881_v45 }
 0x246   :  { %v890_v41 = vsel %vm887_vm4, %v889_v32, %v885_v18 }
 0x24b   :  { %v1896_v63 = vpop.eup %1895 }
 0x24c   :  { %v896_v44 = vmul.f32 %v1896_v63, %v890_v41 }
 0x24e   :  { %v897_v14 = vpack.c.bf16 %v896_v44, %v896_v44 }
 0x250   :  { %1783 = vst [vmem:[%s2591_s6 + $0x8] sm:$0xf] %v897_v14  ;;  %917 = vmatmul.bf16.vlgmr.msra.gmra.mxu0 %v897_v14  ;;  %930 = vmatmul.bf16.vlgmr.msra.gmra.mxu1 %v897_v14 }
 0x251   :  { %943 = vmatmul.bf16.vlgmr.msra.gmra.mxu2 %v897_v14  ;;  %956 = vmatmul.bf16.vlgmr.msra.gmra.mxu3 %v897_v14 }
 0x252   :  { %1171 = vmatpush.bf16.msra.mxu0 %v2071_v16  ;;  %1184 = vmatpush.bf16.msra.mxu1 %v2073_v20 }
 0x253   :  { %1197 = vmatpush.bf16.msra.mxu2 %v2084_v31  ;;  %1210 = vmatpush.bf16.msra.mxu3 %v2075_v21 }
 0x256   :  { %1172 = vmatpush.bf16.msra.mxu0 %v2082_v30  ;;  %1185 = vmatpush.bf16.msra.mxu1 %v2088_v34 }
 0x257   :  { %1198 = vmatpush.bf16.msra.mxu2 %v2093_v42  ;;  %1211 = vmatpush.bf16.msra.mxu3 %v2090_v35 }
 0x25a   :  { %1173 = vmatpush.bf16.msra.mxu0 %v2096_v43  ;;  %1186 = vmatpush.bf16.msra.mxu1 %v2100_v46 }
 0x25b   :  { %1199 = vmatpush.bf16.msra.mxu2 %v2105_v54  ;;  %1212 = vmatpush.bf16.msra.mxu3 %v2102_v47 }
 0x25e   :  { %1174 = vmatpush.bf16.msra.mxu0 %v2111_v57  ;;  %1187 = vmatpush.bf16.msra.mxu1 %v2115_v60 }
 0x25f   :  { %1200 = vmatpush.bf16.msra.mxu2 %v2120_v3  ;;  %1213 = vmatpush.bf16.msra.mxu3 %v2117_v61 }
 0x262   :  { %1175 = vmatpush.bf16.msra.mxu0 %v2123_v6  ;;  %1188 = vmatpush.bf16.msra.mxu1 %v2127_v7 }
 0x263   :  { %1201 = vmatpush.bf16.msra.mxu2 %v2133_v15  ;;  %1214 = vmatpush.bf16.msra.mxu3 %v2129_v8 }
 0x266   :  { %1176 = vmatpush.bf16.msra.mxu0 %v2139_v17  ;;  %1189 = vmatpush.bf16.msra.mxu1 %v2143_v22 }
 0x267   :  { %1202 = vmatpush.bf16.msra.mxu2 %v2148_v28  ;;  %1215 = vmatpush.bf16.msra.mxu3 %v2145_v23 }
 0x26a   :  { %1177 = vmatpush.bf16.msra.mxu0 %v2151_v33  ;;  %1190 = vmatpush.bf16.msra.mxu1 %v2155_v38 }
 0x26b   :  { %1203 = vmatpush.bf16.msra.mxu2 %v2160_v48  ;;  %1216 = vmatpush.bf16.msra.mxu3 %v2157_v39 }
 0x26e   :  { %1178 = vmatpush.bf16.msra.mxu0 %v2163_v53  ;;  %1191 = vmatpush.bf16.msra.mxu1 %v2167_v55 }
 0x26f   :  { %1204 = vmatpush.bf16.msra.mxu2 %v2175_v59  ;;  %1217 = vmatpush.bf16.msra.mxu3 %v2169_v56 }
 0x2cd   :  { %v918_v25 = vpop.f32.mrf.mxu0  ;;  %v931_v62 = vpop.f32.mrf.mxu1 }
 0x2ce   :  { %v961_v50 = vadd.f32 %v918_v25, %v905_v36  ;;  %v962_v5 = vadd.f32 %v931_v62, %v906_v1 }
 0x2d0   :  { %v1784_v4 = vmul.f32 -1.442695, %v961_v50  ;;  %v1785_v0 = vmul.f32 -1.442695, %v962_v5 }
 0x2d2   :  { %1897 = vpow2.f32 %v1784_v4 }
 0x2d3   :  { %1899 = vpow2.f32 %v1785_v0 }
 0x2d4   :  { %v944_v9 = vpop.f32.mrf.mxu2  ;;  %v957_v49 = vpop.f32.mrf.mxu3 }
 0x2d5   :  { %v964_v26 = vadd.f32 %v957_v49, %v908_v13  ;;  %v920_v10 = vpop.f32.mrf.mxu0  ;;  %v933_v58 = vpop.f32.mrf.mxu1  ;;  %v963_v32 = vadd.f32 %v944_v9, %v907_v27 }
 0x2d7   :  { %v1786_v19 = vmul.f32 -1.442695, %v964_v26 }
 0x2d8   :  { %v1898_v29 = vpop.eup %1897 }
 0x2d9   :  { %v1900_v24 = vpop.eup %1899  ;;  %v968_v51 = vadd.f32 1.0, %v1898_v29  ;;  %1901 = vpow2.f32 %v1786_v19 }
 0x2da   :  { %v987_v12 = vadd.f32 1.0, %v1900_v24 }
 0x2db   :  { %1903 = vrcp.f32 %v968_v51  ;;  %v980_v1 = vand.u32 2147483648, %v968_v51  ;;  %v978_v50 = vand.u32 2147483647, %v968_v51  ;;  %vm974_vm7 = vweird.f32 %v968_v51 }
 0x2dc   :  { %1905 = vrcp.f32 %v987_v12  ;;  %v946_v2 = vpop.f32.mrf.mxu2  ;;  %v959_v52 = vpop.f32.mrf.mxu3  ;;  %v999_v25 = vand.u32 2147483648, %v987_v12  ;;  %v997_v4 = vand.u32 2147483647, %v987_v12  ;;  %vm993_vm8 = vweird.f32 %v987_v12 }
 0x2dd   :  { %v981_v13 = vor.u32 1.1754944e-38, %v980_v1  ;;  %vm979_vm11 = vcmp.eq.f32.partialorder %v978_v50, 8.507059e+37 }
 0x2de   :  { %v1000_v26 = vor.u32 1.1754944e-38, %v999_v25  ;;  %vm998_vm12 = vcmp.eq.f32.partialorder %v997_v4, 8.507059e+37 }
 0x2df   :  { %v1902_v45 = vpop.eup %1901 }
 0x2e0   :  { %v1007_v40 = vadd.f32 1.0, %v1902_v45 }
 0x2e1   :  { %v1904_v18 = vpop.eup %1903 }
 0x2e2   :  { %v1906_v63 = vpop.eup %1905  ;;  %v970_v41 = vmul.f32 %v1904_v18, %v968_v51  ;;  %1907 = vrcp.f32 %v1007_v40  ;;  %vm975_vm5 = vweird.f32 %v1904_v18  ;;  %vm1013_vm14 = vweird.f32 %v1007_v40 }
 0x2e3   :  { %v989_v44 = vmul.f32 %v1906_v63, %v987_v12  ;;  %1909 = vtanh.f32 %v963_v32  ;;  %vm994_vm6 = vweird.f32 %v1906_v63  ;;  %vm976_vm9 = vmor %vm974_vm7, %vm975_vm5  ;;  %v1019_v32 = vand.u32 2147483648, %v1007_v40 }
 0x2e4   :  { %v971_v14 = vsub.f32 1.0, %v970_v41  ;;  %vm995_vm10 = vmor %vm993_vm8, %vm994_vm6 }
 0x2e5   :  { %v990_v36 = vsub.f32 1.0, %v989_v44  ;;  %v1020_v44 = vor.u32 1.1754944e-38, %v1019_v32 }
 0x2e6   :  { %v972_v62 = vmul.f32 %v1904_v18, %v971_v14 }
 0x2e7   :  { %v991_v5 = vmul.f32 %v1906_v63, %v990_v36 }
 0x2e8   :  { %v1908_v0 = vpop.eup %1907  ;;  %v973_v37 = vadd.f32 %v1904_v18, %v972_v62 }
 0x2e9   :  { %v992_v9 = vadd.f32 %v1906_v63, %v991_v5  ;;  %v1009_v49 = vmul.f32 %v1908_v0, %v1007_v40  ;;  %v1910_v58 = vpop.eup %1909  ;;  %vm1014_vm13 = vweird.f32 %v1908_v0 }
 0x2ea   :  { %v977_v10 = vsel %vm976_vm9, %v1904_v18, %v973_v37  ;;  %v1017_v18 = vand.u32 2147483647, %v1007_v40  ;;  %vm1015_vm15 = vmor %vm1013_vm14, %vm1014_vm13 }
 0x2eb   :  { %v982_v19 = vsel %vm979_vm11, %v981_v13, %v977_v10  ;;  %v996_v29 = vsel %vm995_vm10, %v1906_v63, %v992_v9  ;;  %v1010_v24 = vsub.f32 1.0, %v1009_v49  ;;  %v2609_v13 = vld [vmem:[#allocation9_spill] sm:$0xff] }
 0x2ec   :  { %v1001_v2 = vsel %vm998_vm12, %v1000_v26, %v996_v29  ;;  %v1024_v52 = vmul.f32 %v1910_v58, %v982_v19  ;;  %vm1018_vm0 = vcmp.eq.f32.partialorder %v1017_v18, 8.507059e+37  ;;  %v1039_v9 = vunpack.c.h.bf16 %v2609_v13 }
 0x2ed   :  { %v1023_v45 = vmul.f32 %v1001_v2, %v2431_v11  ;;  %v1011_v27 = vmul.f32 %v1908_v0, %v1010_v24  ;;  %v2608_v11 = vld [vmem:[#allocation8_spill] sm:$0xff]  ;;  %v1038_v18 = vunpack.c.l.bf16 %v2609_v13 }
 0x2ee   :  { %v1036_v40 = vunpack.c.l.bf16 %v2608_v11  ;;  %v1037_v25 = vunpack.c.h.bf16 %v2608_v11 }
 0x2ef   :  { %v2474_v51 = vadd.f32 %v1024_v52, %v1023_v45  ;;  %v1012_v12 = vadd.f32 %v1908_v0, %v1011_v27 }
 0x2f1   :  { %1911 = vtanh.f32 %v2474_v51  ;;  %v1016_v41 = vsel %vm1015_vm15, %v1908_v0, %v1012_v12 }
 0x2f2   :  { %v1021_v14 = vsel %vm1018_vm0, %v1020_v44, %v1016_v41 }
 0x2f7   :  { %v1912_v63 = vpop.eup %1911 }
 0x2f8   :  { %v1027_v36 = vmul.f32 %v1912_v63, %v1021_v14 }
 0x2fa   :  { %v1028_v1 = vpack.c.bf16 %v1027_v36, %v1027_v36 }
 0x2fc   :  { %1787 = vst [vmem:[%s2591_s6 + $0xc] sm:$0xf] %v1028_v1  ;;  %1048 = vmatmul.bf16.vlgmr.msrb.gmra.mxu0 %v1028_v1  ;;  %1061 = vmatmul.bf16.vlgmr.msrb.gmra.mxu1 %v1028_v1 }
 0x2fd   :  { %1074 = vmatmul.bf16.vlgmr.msrb.gmra.mxu2 %v1028_v1  ;;  %1087 = vmatmul.bf16.vlgmr.msrb.gmra.mxu3 %v1028_v1 }
 0x2fe   :  { %1302 = vmatpush.bf16.msrb.mxu0 %v2071_v16  ;;  %1315 = vmatpush.bf16.msrb.mxu1 %v2073_v20 }
 0x2ff   :  { %1328 = vmatpush.bf16.msrb.mxu2 %v2084_v31  ;;  %1341 = vmatpush.bf16.msrb.mxu3 %v2075_v21 }
 0x302   :  { %1303 = vmatpush.bf16.msrb.mxu0 %v2082_v30  ;;  %1316 = vmatpush.bf16.msrb.mxu1 %v2088_v34 }
 0x303   :  { %1329 = vmatpush.bf16.msrb.mxu2 %v2093_v42  ;;  %1342 = vmatpush.bf16.msrb.mxu3 %v2090_v35 }
 0x306   :  { %1304 = vmatpush.bf16.msrb.mxu0 %v2096_v43  ;;  %1317 = vmatpush.bf16.msrb.mxu1 %v2100_v46 }
 0x307   :  { %1330 = vmatpush.bf16.msrb.mxu2 %v2105_v54  ;;  %1343 = vmatpush.bf16.msrb.mxu3 %v2102_v47 }
 0x30a   :  { %1305 = vmatpush.bf16.msrb.mxu0 %v2111_v57  ;;  %1318 = vmatpush.bf16.msrb.mxu1 %v2115_v60 }
 0x30b   :  { %1331 = vmatpush.bf16.msrb.mxu2 %v2120_v3  ;;  %1344 = vmatpush.bf16.msrb.mxu3 %v2117_v61 }
 0x30e   :  { %1306 = vmatpush.bf16.msrb.mxu0 %v2123_v6  ;;  %1319 = vmatpush.bf16.msrb.mxu1 %v2127_v7 }
 0x30f   :  { %1332 = vmatpush.bf16.msrb.mxu2 %v2133_v15  ;;  %1345 = vmatpush.bf16.msrb.mxu3 %v2129_v8 }
 0x312   :  { %1307 = vmatpush.bf16.msrb.mxu0 %v2139_v17  ;;  %1320 = vmatpush.bf16.msrb.mxu1 %v2143_v22 }
 0x313   :  { %1333 = vmatpush.bf16.msrb.mxu2 %v2148_v28  ;;  %1346 = vmatpush.bf16.msrb.mxu3 %v2145_v23 }
 0x316   :  { %1308 = vmatpush.bf16.msrb.mxu0 %v2151_v33  ;;  %1321 = vmatpush.bf16.msrb.mxu1 %v2155_v38 }
 0x317   :  { %1334 = vmatpush.bf16.msrb.mxu2 %v2160_v48  ;;  %1347 = vmatpush.bf16.msrb.mxu3 %v2157_v39 }
 0x31a   :  { %1309 = vmatpush.bf16.msrb.mxu0 %v2163_v53  ;;  %1322 = vmatpush.bf16.msrb.mxu1 %v2167_v55 }
 0x31b   :  { %1335 = vmatpush.bf16.msrb.mxu2 %v2175_v59  ;;  %1348 = vmatpush.bf16.msrb.mxu3 %v2169_v56 }
 0x379   :  { %v1049_v62 = vpop.f32.mrf.mxu0  ;;  %v1062_v50 = vpop.f32.mrf.mxu1 }
 0x37a   :  { %v1092_v5 = vadd.f32 %v1049_v62, %v1036_v40  ;;  %v1093_v4 = vadd.f32 %v1062_v50, %v1037_v25 }
 0x37c   :  { %v1788_v0 = vmul.f32 -1.442695, %v1092_v5  ;;  %v1789_v37 = vmul.f32 -1.442695, %v1093_v4 }
 0x37e   :  { %1913 = vpow2.f32 %v1788_v0 }
 0x37f   :  { %1915 = vpow2.f32 %v1789_v37 }
 0x380   :  { %v1075_v49 = vpop.f32.mrf.mxu2  ;;  %v1088_v26 = vpop.f32.mrf.mxu3 }
 0x381   :  { %v1095_v10 = vadd.f32 %v1088_v26, %v1039_v9  ;;  %v1051_v58 = vpop.f32.mrf.mxu0  ;;  %v1064_v19 = vpop.f32.mrf.mxu1  ;;  %v1094_v63 = vadd.f32 %v1075_v49, %v1038_v18 }
 0x383   :  { %v1790_v29 = vmul.f32 -1.442695, %v1095_v10 }
 0x384   :  { %v1914_v24 = vpop.eup %1913 }
 0x385   :  { %v1916_v2 = vpop.eup %1915  ;;  %v1099_v52 = vadd.f32 1.0, %v1914_v24  ;;  %1917 = vpow2.f32 %v1790_v29 }
 0x386   :  { %v1118_v45 = vadd.f32 1.0, %v1916_v2 }
 0x387   :  { %1919 = vrcp.f32 %v1099_v52  ;;  %v1111_v25 = vand.u32 2147483648, %v1099_v52  ;;  %v1109_v5 = vand.u32 2147483647, %v1099_v52  ;;  %vm1105_vm3 = vweird.f32 %v1099_v52 }
 0x388   :  { %1921 = vrcp.f32 %v1118_v45  ;;  %v1077_v27 = vpop.f32.mrf.mxu2  ;;  %v1090_v12 = vpop.f32.mrf.mxu3  ;;  %v1130_v62 = vand.u32 2147483648, %v1118_v45  ;;  %v1128_v0 = vand.u32 2147483647, %v1118_v45  ;;  %vm1124_vm4 = vweird.f32 %v1118_v45 }
 0x389   :  { %v1112_v9 = vor.u32 1.1754944e-38, %v1111_v25  ;;  %vm1110_vm7 = vcmp.eq.f32.partialorder %v1109_v5, 8.507059e+37 }
 0x38a   :  { %v1131_v10 = vor.u32 1.1754944e-38, %v1130_v62  ;;  %vm1129_vm8 = vcmp.eq.f32.partialorder %v1128_v0, 8.507059e+37 }
 0x38b   :  { %v1918_v32 = vpop.eup %1917 }
 0x38c   :  { %v1138_v41 = vadd.f32 1.0, %v1918_v32 }
 0x38d   :  { %v1920_v44 = vpop.eup %1919 }
 0x38e   :  { %v1922_v14 = vpop.eup %1921  ;;  %v1101_v36 = vmul.f32 %v1920_v44, %v1099_v52  ;;  %1923 = vrcp.f32 %v1138_v41  ;;  %vm1106_vm1 = vweird.f32 %v1920_v44  ;;  %vm1144_vm10 = vweird.f32 %v1138_v41 }
 0x38f   :  { %v1120_v1 = vmul.f32 %v1922_v14, %v1118_v45  ;;  %1925 = vtanh.f32 %v1094_v63  ;;  %vm1125_vm2 = vweird.f32 %v1922_v14  ;;  %vm1107_vm5 = vmor %vm1105_vm3, %vm1106_vm1  ;;  %v1150_v63 = vand.u32 2147483648, %v1138_v41 }
 0x390   :  { %v1102_v11 = vsub.f32 1.0, %v1101_v36  ;;  %vm1126_vm6 = vmor %vm1124_vm4, %vm1125_vm2 }
 0x391   :  { %v1121_v40 = vsub.f32 1.0, %v1120_v1  ;;  %v1151_v1 = vor.u32 1.1754944e-38, %v1150_v63 }
 0x392   :  { %v1103_v50 = vmul.f32 %v1920_v44, %v1102_v11 }
 0x393   :  { %v1122_v4 = vmul.f32 %v1922_v14, %v1121_v40 }
 0x394   :  { %v1924_v37 = vpop.eup %1923  ;;  %v1104_v13 = vadd.f32 %v1920_v44, %v1103_v50 }
 0x395   :  { %v1123_v49 = vadd.f32 %v1922_v14, %v1122_v4  ;;  %v1140_v26 = vmul.f32 %v1924_v37, %v1138_v41  ;;  %v1926_v19 = vpop.eup %1925  ;;  %vm1145_vm9 = vweird.f32 %v1924_v37 }
 0x396   :  { %v1108_v58 = vsel %vm1107_vm5, %v1920_v44, %v1104_v13  ;;  %v1148_v44 = vand.u32 2147483647, %v1138_v41  ;;  %vm1146_vm11 = vmor %vm1144_vm10, %vm1145_vm9 }
 0x397   :  { %v1113_v29 = vsel %vm1110_vm7, %v1112_v9, %v1108_v58  ;;  %v1127_v24 = vsel %vm1126_vm6, %v1922_v14, %v1123_v49  ;;  %v1141_v2 = vsub.f32 1.0, %v1140_v26 }
 0x398   :  { %v1132_v27 = vsel %vm1129_vm8, %v1131_v10, %v1127_v24  ;;  %v1155_v12 = vmul.f32 %v1926_v19, %v1113_v29  ;;  %vm1149_vm12 = vcmp.eq.f32.partialorder %v1148_v44, 8.507059e+37 }
 0x399   :  { %v1154_v32 = vmul.f32 %v1132_v27, %v2474_v51  ;;  %v1142_v18 = vmul.f32 %v1924_v37, %v1141_v2 }
 0x39b   :  { %v2517_v52 = vadd.f32 %v1155_v12, %v1154_v32  ;;  %v1143_v45 = vadd.f32 %v1924_v37, %v1142_v18 }
 0x39d   :  { %1927 = vtanh.f32 %v2517_v52  ;;  %v1147_v36 = vsel %vm1146_vm11, %v1924_v37, %v1143_v45 }
 0x39e   :  { %v1152_v11 = vsel %vm1149_vm12, %v1151_v1, %v1147_v36 }
 0x3a3   :  { %v1928_v14 = vpop.eup %1927 }
 0x3a4   :  { %v1158_v40 = vmul.f32 %v1928_v14, %v1152_v11 }
 0x3a6   :  { %v1159_v25 = vpack.c.bf16 %v1158_v40, %v1158_v40 }
 0x3a8   :  { %1791 = vst [vmem:[%s2591_s6 + $0x10] sm:$0xf] %v1159_v25  ;;  %1179 = vmatmul.bf16.vlgmr.msra.gmra.mxu0 %v1159_v25  ;;  %1192 = vmatmul.bf16.vlgmr.msra.gmra.mxu1 %v1159_v25 }
 0x3a9   :  { %1205 = vmatmul.bf16.vlgmr.msra.gmra.mxu2 %v1159_v25  ;;  %1218 = vmatmul.bf16.vlgmr.msra.gmra.mxu3 %v1159_v25 }
 0x3aa   :  { %1433 = vmatpush.bf16.msra.mxu0 %v2071_v16  ;;  %1446 = vmatpush.bf16.msra.mxu1 %v2073_v20  ;;  %v2610_v16 = vld [vmem:[#allocation10_spill] sm:$0xff] }
 0x3ab   :  { %1459 = vmatpush.bf16.msra.mxu2 %v2084_v31  ;;  %1472 = vmatpush.bf16.msra.mxu3 %v2075_v21  ;;  %v1167_v20 = vunpack.c.l.bf16 %v2610_v16  ;;  %v1168_v21 = vunpack.c.h.bf16 %v2610_v16 }
 0x3ae   :  { %1434 = vmatpush.bf16.msra.mxu0 %v2082_v30  ;;  %1447 = vmatpush.bf16.msra.mxu1 %v2088_v34 }
 0x3af   :  { %1460 = vmatpush.bf16.msra.mxu2 %v2093_v42  ;;  %1473 = vmatpush.bf16.msra.mxu3 %v2090_v35 }
 0x3b2   :  { %1435 = vmatpush.bf16.msra.mxu0 %v2096_v43  ;;  %1448 = vmatpush.bf16.msra.mxu1 %v2100_v46  ;;  %v2611_v46 = vld [vmem:[#allocation11_spill] sm:$0xff] }
 0x3b3   :  { %1461 = vmatpush.bf16.msra.mxu2 %v2105_v54  ;;  %1474 = vmatpush.bf16.msra.mxu3 %v2102_v47  ;;  %v1170_v47 = vunpack.c.h.bf16 %v2611_v46 }
 0x3b6   :  { %1436 = vmatpush.bf16.msra.mxu0 %v2111_v57  ;;  %1449 = vmatpush.bf16.msra.mxu1 %v2115_v60 }
 0x3b7   :  { %1462 = vmatpush.bf16.msra.mxu2 %v2120_v3  ;;  %1475 = vmatpush.bf16.msra.mxu3 %v2117_v61 }
 0x3ba   :  { %1437 = vmatpush.bf16.msra.mxu0 %v2123_v6  ;;  %1450 = vmatpush.bf16.msra.mxu1 %v2127_v7 }
 0x3bb   :  { %1463 = vmatpush.bf16.msra.mxu2 %v2133_v15  ;;  %1476 = vmatpush.bf16.msra.mxu3 %v2129_v8 }
 0x3be   :  { %1438 = vmatpush.bf16.msra.mxu0 %v2139_v17  ;;  %1451 = vmatpush.bf16.msra.mxu1 %v2143_v22 }
 0x3bf   :  { %1464 = vmatpush.bf16.msra.mxu2 %v2148_v28  ;;  %1477 = vmatpush.bf16.msra.mxu3 %v2145_v23 }
 0x3c2   :  { %1439 = vmatpush.bf16.msra.mxu0 %v2151_v33  ;;  %1452 = vmatpush.bf16.msra.mxu1 %v2155_v38  ;;  %v1169_v33 = vunpack.c.l.bf16 %v2611_v46  ;;  %v2613_v46 = vld [vmem:[#allocation13_spill] sm:$0xff] }
 0x3c3   :  { %1465 = vmatpush.bf16.msra.mxu2 %v2160_v48  ;;  %1478 = vmatpush.bf16.msra.mxu3 %v2157_v39 }
 0x3c6   :  { %1440 = vmatpush.bf16.msra.mxu0 %v2163_v53  ;;  %1453 = vmatpush.bf16.msra.mxu1 %v2167_v55 }
 0x3c7   :  { %1466 = vmatpush.bf16.msra.mxu2 %v2175_v59  ;;  %1479 = vmatpush.bf16.msra.mxu3 %v2169_v56 }
 0x425   :  { %v1180_v30 = vpop.f32.mrf.mxu0  ;;  %v1193_v31 = vpop.f32.mrf.mxu1 }
 0x426   :  { %v1223_v34 = vadd.f32 %v1180_v30, %v1167_v20  ;;  %v1224_v35 = vadd.f32 %v1193_v31, %v1168_v21 }
 0x428   :  { %v1792_v42 = vmul.f32 -1.442695, %v1223_v34  ;;  %v1793_v43 = vmul.f32 -1.442695, %v1224_v35 }
 0x42a   :  { %1929 = vpow2.f32 %v1792_v42 }
 0x42b   :  { %1931 = vpow2.f32 %v1793_v43 }
 0x42c   :  { %v1206_v54 = vpop.f32.mrf.mxu2  ;;  %v1219_v57 = vpop.f32.mrf.mxu3 }
 0x42d   :  { %v1226_v60 = vadd.f32 %v1219_v57, %v1170_v47  ;;  %v1182_v61 = vpop.f32.mrf.mxu0  ;;  %v1195_v3 = vpop.f32.mrf.mxu1  ;;  %v1225_v48 = vadd.f32 %v1206_v54, %v1169_v33  ;;  %v1301_v47 = vunpack.c.h.bf16 %v2613_v46  ;;  %v1300_v33 = vunpack.c.l.bf16 %v2613_v46  ;;  %v2615_v46 = vld [vmem:[#allocation15_spill] sm:$0xff] }
 0x42f   :  { %v1794_v6 = vmul.f32 -1.442695, %v1226_v60 }
 0x430   :  { %v1930_v7 = vpop.eup %1929 }
 0x431   :  { %v1932_v8 = vpop.eup %1931  ;;  %v1230_v15 = vadd.f32 1.0, %v1930_v7  ;;  %1933 = vpow2.f32 %v1794_v6 }
 0x432   :  { %v1249_v17 = vadd.f32 1.0, %v1932_v8 }
 0x433   :  { %1935 = vrcp.f32 %v1230_v15  ;;  %v1242_v41 = vand.u32 2147483648, %v1230_v15  ;;  %v1240_v5 = vand.u32 2147483647, %v1230_v15  ;;  %vm1236_vm15 = vweird.f32 %v1230_v15 }
 0x434   :  { %1937 = vrcp.f32 %v1249_v17  ;;  %v1208_v22 = vpop.f32.mrf.mxu2  ;;  %v1221_v23 = vpop.f32.mrf.mxu3  ;;  %v1261_v62 = vand.u32 2147483648, %v1249_v17  ;;  %v1259_v0 = vand.u32 2147483647, %v1249_v17  ;;  %vm1255_vm0 = vweird.f32 %v1249_v17 }
 0x435   :  { %v1243_v9 = vor.u32 1.1754944e-38, %v1242_v41  ;;  %vm1241_vm3 = vcmp.eq.f32.partialorder %v1240_v5, 8.507059e+37 }
 0x436   :  { %v1262_v10 = vor.u32 1.1754944e-38, %v1261_v62  ;;  %vm1260_vm4 = vcmp.eq.f32.partialorder %v1259_v0, 8.507059e+37 }
 0x437   :  { %v1934_v28 = vpop.eup %1933 }
 0x438   :  { %v1269_v38 = vadd.f32 1.0, %v1934_v28 }
 0x439   :  { %v1936_v39 = vpop.eup %1935 }
 0x43a   :  { %v1938_v53 = vpop.eup %1937  ;;  %v1232_v55 = vmul.f32 %v1936_v39, %v1230_v15  ;;  %1939 = vrcp.f32 %v1269_v38  ;;  %vm1237_vm13 = vweird.f32 %v1936_v39  ;;  %v1281_v44 = vand.u32 2147483648, %v1269_v38 }
 0x43b   :  { %v1251_v56 = vmul.f32 %v1938_v53, %v1249_v17  ;;  %1941 = vtanh.f32 %v1225_v48  ;;  %vm1256_vm14 = vweird.f32 %v1938_v53  ;;  %vm1238_vm1 = vmor %vm1236_vm15, %vm1237_vm13  ;;  %vm1275_vm6 = vweird.f32 %v1269_v38 }
 0x43c   :  { %v1233_v59 = vsub.f32 1.0, %v1232_v55  ;;  %vm1257_vm2 = vmor %vm1255_vm0, %vm1256_vm14  ;;  %v1279_v36 = vand.u32 2147483647, %v1269_v38  ;;  %v1282_v14 = vor.u32 1.1754944e-38, %v1281_v44 }
 0x43d   :  { %v1252_v51 = vsub.f32 1.0, %v1251_v56 }
 0x43e   :  { %v1234_v50 = vmul.f32 %v1936_v39, %v1233_v59  ;;  %vm1280_vm8 = vcmp.eq.f32.partialorder %v1279_v36, 8.507059e+37 }
 0x43f   :  { %v1253_v4 = vmul.f32 %v1938_v53, %v1252_v51 }
 0x440   :  { %v1940_v37 = vpop.eup %1939  ;;  %v1235_v13 = vadd.f32 %v1936_v39, %v1234_v50 }
 0x441   :  { %v1254_v49 = vadd.f32 %v1938_v53, %v1253_v4  ;;  %v1271_v26 = vmul.f32 %v1940_v37, %v1269_v38  ;;  %v1942_v19 = vpop.eup %1941  ;;  %vm1276_vm5 = vweird.f32 %v1940_v37 }
 0x442   :  { %v1239_v58 = vsel %vm1238_vm1, %v1936_v39, %v1235_v13  ;;  %vm1277_vm7 = vmor %vm1275_vm6, %vm1276_vm5 }
 0x443   :  { %v1244_v29 = vsel %vm1241_vm3, %v1243_v9, %v1239_v58  ;;  %v1258_v24 = vsel %vm1257_vm2, %v1938_v53, %v1254_v49  ;;  %v1272_v2 = vsub.f32 1.0, %v1271_v26 }
 0x444   :  { %v1263_v27 = vsel %vm1260_vm4, %v1262_v10, %v1258_v24  ;;  %v1286_v12 = vmul.f32 %v1942_v19, %v1244_v29 }
 0x445   :  { %v1285_v32 = vmul.f32 %v1263_v27, %v2517_v52  ;;  %v1273_v18 = vmul.f32 %v1940_v37, %v1272_v2  ;;  %v2612_v52 = vld [vmem:[#allocation12_spill] sm:$0xff] }
 0x446   :  { %v1298_v20 = vunpack.c.l.bf16 %v2612_v52  ;;  %v1299_v21 = vunpack.c.h.bf16 %v2612_v52 }
 0x447   :  { %v2560_v45 = vadd.f32 %v1286_v12, %v1285_v32  ;;  %v1274_v63 = vadd.f32 %v1940_v37, %v1273_v18 }
 0x449   :  { %1943 = vtanh.f32 %v2560_v45  ;;  %v1278_v1 = vsel %vm1277_vm7, %v1940_v37, %v1274_v63 }
 0x44a   :  { %v1283_v40 = vsel %vm1280_vm8, %v1282_v14, %v1278_v1 }
 0x44f   :  { %v1944_v11 = vpop.eup %1943 }
 0x450   :  { %v1289_v25 = vmul.f32 %v1944_v11, %v1283_v40 }
 0x452   :  { %v1290_v16 = vpack.c.bf16 %v1289_v25, %v1289_v25 }
 0x454   :  { %1795 = vst [vmem:[%s2591_s6 + $0x14] sm:$0xf] %v1290_v16  ;;  %1310 = vmatmul.bf16.vlgmr.msrb.gmra.mxu0 %v1290_v16  ;;  %1323 = vmatmul.bf16.vlgmr.msrb.gmra.mxu1 %v1290_v16 }
 0x455   :  { %1336 = vmatmul.bf16.vlgmr.msrb.gmra.mxu2 %v1290_v16  ;;  %1349 = vmatmul.bf16.vlgmr.msrb.gmra.mxu3 %v1290_v16 }
 0x4d1   :  { %v1311_v30 = vpop.f32.mrf.mxu0  ;;  %v1324_v31 = vpop.f32.mrf.mxu1 }
 0x4d2   :  { %v1354_v34 = vadd.f32 %v1311_v30, %v1298_v20  ;;  %v1355_v35 = vadd.f32 %v1324_v31, %v1299_v21 }
 0x4d4   :  { %v1796_v42 = vmul.f32 -1.442695, %v1354_v34  ;;  %v1797_v43 = vmul.f32 -1.442695, %v1355_v35 }
 0x4d6   :  { %1945 = vpow2.f32 %v1796_v42 }
 0x4d7   :  { %1947 = vpow2.f32 %v1797_v43 }
 0x4d8   :  { %v1337_v54 = vpop.f32.mrf.mxu2  ;;  %v1350_v57 = vpop.f32.mrf.mxu3 }
 0x4d9   :  { %v1357_v60 = vadd.f32 %v1350_v57, %v1301_v47  ;;  %v1313_v61 = vpop.f32.mrf.mxu0  ;;  %v1326_v3 = vpop.f32.mrf.mxu1  ;;  %v1356_v48 = vadd.f32 %v1337_v54, %v1300_v33  ;;  %v1432_v47 = vunpack.c.h.bf16 %v2615_v46  ;;  %v1431_v33 = vunpack.c.l.bf16 %v2615_v46 }
 0x4db   :  { %v1798_v6 = vmul.f32 -1.442695, %v1357_v60 }
 0x4dc   :  { %v1946_v7 = vpop.eup %1945 }
 0x4dd   :  { %v1948_v8 = vpop.eup %1947  ;;  %v1361_v15 = vadd.f32 1.0, %v1946_v7  ;;  %1949 = vpow2.f32 %v1798_v6 }
 0x4de   :  { %v1380_v17 = vadd.f32 1.0, %v1948_v8 }
 0x4df   :  { %1951 = vrcp.f32 %v1361_v15  ;;  %v1373_v41 = vand.u32 2147483648, %v1361_v15  ;;  %v1371_v5 = vand.u32 2147483647, %v1361_v15  ;;  %vm1367_vm11 = vweird.f32 %v1361_v15 }
 0x4e0   :  { %1953 = vrcp.f32 %v1380_v17  ;;  %v1339_v22 = vpop.f32.mrf.mxu2  ;;  %v1352_v23 = vpop.f32.mrf.mxu3  ;;  %v1392_v62 = vand.u32 2147483648, %v1380_v17  ;;  %v1390_v0 = vand.u32 2147483647, %v1380_v17  ;;  %vm1386_vm12 = vweird.f32 %v1380_v17 }
 0x4e1   :  { %v1374_v9 = vor.u32 1.1754944e-38, %v1373_v41  ;;  %vm1372_vm15 = vcmp.eq.f32.partialorder %v1371_v5, 8.507059e+37 }
 0x4e2   :  { %v1393_v10 = vor.u32 1.1754944e-38, %v1392_v62  ;;  %vm1391_vm0 = vcmp.eq.f32.partialorder %v1390_v0, 8.507059e+37 }
 0x4e3   :  { %v1950_v28 = vpop.eup %1949 }
 0x4e4   :  { %v1400_v38 = vadd.f32 1.0, %v1950_v28 }
 0x4e5   :  { %v1952_v39 = vpop.eup %1951 }
 0x4e6   :  { %v1954_v53 = vpop.eup %1953  ;;  %v1363_v55 = vmul.f32 %v1952_v39, %v1361_v15  ;;  %1955 = vrcp.f32 %v1400_v38  ;;  %vm1368_vm9 = vweird.f32 %v1952_v39  ;;  %v1412_v36 = vand.u32 2147483648, %v1400_v38 }
 0x4e7   :  { %v1382_v56 = vmul.f32 %v1954_v53, %v1380_v17  ;;  %1957 = vtanh.f32 %v1356_v48  ;;  %vm1387_vm10 = vweird.f32 %v1954_v53  ;;  %vm1369_vm13 = vmor %vm1367_vm11, %vm1368_vm9  ;;  %vm1406_vm2 = vweird.f32 %v1400_v38 }
 0x4e8   :  { %v1364_v59 = vsub.f32 1.0, %v1363_v55  ;;  %vm1388_vm14 = vmor %vm1386_vm12, %vm1387_vm10  ;;  %v1410_v1 = vand.u32 2147483647, %v1400_v38  ;;  %v1413_v11 = vor.u32 1.1754944e-38, %v1412_v36 }
 0x4e9   :  { %v1383_v51 = vsub.f32 1.0, %v1382_v56 }
 0x4ea   :  { %v1365_v50 = vmul.f32 %v1952_v39, %v1364_v59  ;;  %vm1411_vm4 = vcmp.eq.f32.partialorder %v1410_v1, 8.507059e+37 }
 0x4eb   :  { %v1384_v4 = vmul.f32 %v1954_v53, %v1383_v51 }
 0x4ec   :  { %v1956_v37 = vpop.eup %1955  ;;  %v1366_v13 = vadd.f32 %v1952_v39, %v1365_v50 }
 0x4ed   :  { %v1385_v49 = vadd.f32 %v1954_v53, %v1384_v4  ;;  %v1402_v26 = vmul.f32 %v1956_v37, %v1400_v38  ;;  %v1958_v19 = vpop.eup %1957  ;;  %vm1407_vm1 = vweird.f32 %v1956_v37 }
 0x4ee   :  { %v1370_v58 = vsel %vm1369_vm13, %v1952_v39, %v1366_v13  ;;  %vm1408_vm3 = vmor %vm1406_vm2, %vm1407_vm1 }
 0x4ef   :  { %v1375_v29 = vsel %vm1372_vm15, %v1374_v9, %v1370_v58  ;;  %v1389_v24 = vsel %vm1388_vm14, %v1954_v53, %v1385_v49  ;;  %v1403_v2 = vsub.f32 1.0, %v1402_v26 }
 0x4f0   :  { %v1394_v27 = vsel %vm1391_vm0, %v1393_v10, %v1389_v24  ;;  %v1417_v12 = vmul.f32 %v1958_v19, %v1375_v29 }
 0x4f1   :  { %v1416_v32 = vmul.f32 %v1394_v27, %v2560_v45  ;;  %v1404_v18 = vmul.f32 %v1956_v37, %v1403_v2  ;;  %v2614_v45 = vld [vmem:[#allocation14_spill] sm:$0xff] }
 0x4f2   :  { %v1429_v20 = vunpack.c.l.bf16 %v2614_v45  ;;  %v1430_v21 = vunpack.c.h.bf16 %v2614_v45 }
 0x4f3   :  { %v2571_v63 = vadd.f32 %v1417_v12, %v1416_v32  ;;  %v1405_v44 = vadd.f32 %v1956_v37, %v1404_v18 }
 0x4f5   :  { %1959 = vtanh.f32 %v2571_v63  ;;  %v1409_v14 = vsel %vm1408_vm3, %v1956_v37, %v1405_v44 }
 0x4f6   :  { %v1414_v25 = vsel %vm1411_vm4, %v1413_v11, %v1409_v14 }
 0x4fb   :  { %v1960_v40 = vpop.eup %1959 }
 0x4fc   :  { %v1420_v16 = vmul.f32 %v1960_v40, %v1414_v25 }
 0x4fe   :  { %v1421_v52 = vpack.c.bf16 %v1420_v16, %v1420_v16 }
 0x500   :  { %1799 = vst [vmem:[%s2591_s6 + $0x18] sm:$0xf] %v1421_v52  ;;  %1441 = vmatmul.bf16.vlgmr.msra.gmra.mxu0 %v1421_v52  ;;  %1454 = vmatmul.bf16.vlgmr.msra.gmra.mxu1 %v1421_v52 }
 0x501   :  { %1467 = vmatmul.bf16.vlgmr.msra.gmra.mxu2 %v1421_v52  ;;  %1480 = vmatmul.bf16.vlgmr.msra.gmra.mxu3 %v1421_v52 }
 0x57d   :  { %v1442_v30 = vpop.f32.mrf.mxu0  ;;  %v1455_v31 = vpop.f32.mrf.mxu1 }
 0x57e   :  { %v1485_v34 = vadd.f32 %v1442_v30, %v1429_v20  ;;  %v1486_v35 = vadd.f32 %v1455_v31, %v1430_v21 }
 0x580   :  { %v1800_v42 = vmul.f32 -1.442695, %v1485_v34  ;;  %v1801_v43 = vmul.f32 -1.442695, %v1486_v35 }
 0x582   :  { %1961 = vpow2.f32 %v1800_v42 }
 0x583   :  { %1963 = vpow2.f32 %v1801_v43 }
 0x584   :  { %v1468_v54 = vpop.f32.mrf.mxu2  ;;  %v1481_v57 = vpop.f32.mrf.mxu3 }
 0x585   :  { %v1488_v60 = vadd.f32 %v1481_v57, %v1432_v47  ;;  %v1444_v61 = vpop.f32.mrf.mxu0  ;;  %v1457_v3 = vpop.f32.mrf.mxu1  ;;  %v1487_v48 = vadd.f32 %v1468_v54, %v1431_v33 }
 0x587   :  { %v1802_v6 = vmul.f32 -1.442695, %v1488_v60 }
 0x588   :  { %v1962_v7 = vpop.eup %1961 }
 0x589   :  { %v1964_v8 = vpop.eup %1963  ;;  %v1492_v15 = vadd.f32 1.0, %v1962_v7  ;;  %1965 = vpow2.f32 %v1802_v6 }
 0x58a   :  { %v1511_v17 = vadd.f32 1.0, %v1964_v8 }
 0x58b   :  { %1967 = vrcp.f32 %v1492_v15  ;;  %v1504_v41 = vand.u32 2147483648, %v1492_v15  ;;  %v1502_v5 = vand.u32 2147483647, %v1492_v15  ;;  %vm1498_vm7 = vweird.f32 %v1492_v15 }
 0x58c   :  { %1969 = vrcp.f32 %v1511_v17  ;;  %v1470_v22 = vpop.f32.mrf.mxu2  ;;  %v1483_v23 = vpop.f32.mrf.mxu3  ;;  %v1523_v62 = vand.u32 2147483648, %v1511_v17  ;;  %v1521_v0 = vand.u32 2147483647, %v1511_v17  ;;  %vm1517_vm8 = vweird.f32 %v1511_v17 }
 0x58d   :  { %v1505_v9 = vor.u32 1.1754944e-38, %v1504_v41  ;;  %vm1503_vm11 = vcmp.eq.f32.partialorder %v1502_v5, 8.507059e+37 }
 0x58e   :  { %v1524_v10 = vor.u32 1.1754944e-38, %v1523_v62  ;;  %vm1522_vm12 = vcmp.eq.f32.partialorder %v1521_v0, 8.507059e+37 }
 0x58f   :  { %v1966_v28 = vpop.eup %1965 }
 0x590   :  { %v1531_v38 = vadd.f32 1.0, %v1966_v28 }
 0x591   :  { %v1968_v39 = vpop.eup %1967 }
 0x592   :  { %v1970_v53 = vpop.eup %1969  ;;  %v1494_v55 = vmul.f32 %v1968_v39, %v1492_v15  ;;  %1971 = vrcp.f32 %v1531_v38  ;;  %vm1499_vm5 = vweird.f32 %v1968_v39  ;;  %v1543_v1 = vand.u32 2147483648, %v1531_v38 }
 0x593   :  { %v1513_v56 = vmul.f32 %v1970_v53, %v1511_v17  ;;  %1973 = vtanh.f32 %v1487_v48  ;;  %vm1518_vm6 = vweird.f32 %v1970_v53  ;;  %vm1500_vm9 = vmor %vm1498_vm7, %vm1499_vm5  ;;  %vm1537_vm14 = vweird.f32 %v1531_v38 }
 0x594   :  { %v1495_v59 = vsub.f32 1.0, %v1494_v55  ;;  %vm1519_vm10 = vmor %vm1517_vm8, %vm1518_vm6  ;;  %v1541_v14 = vand.u32 2147483647, %v1531_v38  ;;  %v1544_v40 = vor.u32 1.1754944e-38, %v1543_v1 }
 0x595   :  { %v1514_v51 = vsub.f32 1.0, %v1513_v56 }
 0x596   :  { %v1496_v50 = vmul.f32 %v1968_v39, %v1495_v59  ;;  %vm1542_vm0 = vcmp.eq.f32.partialorder %v1541_v14, 8.507059e+37 }
 0x597   :  { %v1515_v4 = vmul.f32 %v1970_v53, %v1514_v51 }
 0x598   :  { %v1972_v37 = vpop.eup %1971  ;;  %v1497_v13 = vadd.f32 %v1968_v39, %v1496_v50 }
 0x599   :  { %v1516_v49 = vadd.f32 %v1970_v53, %v1515_v4  ;;  %v1533_v26 = vmul.f32 %v1972_v37, %v1531_v38  ;;  %v1974_v19 = vpop.eup %1973  ;;  %vm1538_vm13 = vweird.f32 %v1972_v37 }
 0x59a   :  { %v1501_v58 = vsel %vm1500_vm9, %v1968_v39, %v1497_v13  ;;  %vm1539_vm15 = vmor %vm1537_vm14, %vm1538_vm13 }
 0x59b   :  { %v1506_v29 = vsel %vm1503_vm11, %v1505_v9, %v1501_v58  ;;  %v1520_v24 = vsel %vm1519_vm10, %v1970_v53, %v1516_v49  ;;  %v1534_v2 = vsub.f32 1.0, %v1533_v26 }
 0x59c   :  { %v1525_v27 = vsel %vm1522_vm12, %v1524_v10, %v1520_v24  ;;  %v1548_v12 = vmul.f32 %v1974_v19, %v1506_v29 }
 0x59d   :  { %v1547_v32 = vmul.f32 %v1525_v27, %v2571_v63  ;;  %v1535_v18 = vmul.f32 %v1972_v37, %v1534_v2 }
 0x59f   :  { %v1549_v44 = vadd.f32 %v1548_v12, %v1547_v32  ;;  %v1536_v36 = vadd.f32 %v1972_v37, %v1535_v18 }
 0x5a1   :  { %1975 = vtanh.f32 %v1549_v44  ;;  %v1540_v11 = vsel %vm1539_vm15, %v1972_v37, %v1536_v36 }
 0x5a2   :  { %v1545_v16 = vsel %vm1542_vm0, %v1544_v40, %v1540_v11 }
 0x5a7   :  { %v1976_v25 = vpop.eup %1975 }
 0x5a8   :  { %v1551_v52 = vmul.f32 %v1976_v25, %v1545_v16 }
 0x5aa   :  { %v1552_v45 = vpack.c.bf16 %v1551_v52, %v1551_v52 }
 0x5ac   :  { %1803 = vst [vmem:[%s2591_s6 + $0x1c] sm:$0xf] %v1552_v45 }
 0x5ad   :  { %1575 = vsyncpa [#allocation6], 1 }

</bundles_post_ra>
